<compile_context>
chip_gen: v7x
topology: tpu7x:2x2x1
jax: 0.10.0
libtpu: 0.0.40
codegen_flags: <defaults>
</compile_context>

<pallas_src>
import functools

import jax
import jax.numpy as jnp
import numpy as np
from jax import lax
from jax.experimental import pallas as pl
from jax.experimental.pallas import tpu as pltpu


# ---------------------------------------------------------------------------
# Pallas kernel: fused per-sample dynamic 3x3 conv + BN affine + (residual) + ReLU
# ---------------------------------------------------------------------------
def _dynconv_compute(x_ref, ch_ref, w_ref, m_ref, s_ref, b_ref, r_ref, o_ref, p_ref,
                     *, H, W):
    # x_ref : (Cin, HW)      bf16  activations, HW on the lane axis
    # ch_ref: (Cin, 1)       f32   channel attention
    # w_ref : (9, Cout, Cin) bf16  per-sample aggregated weight, tap-major (kh*3+kw)
    # m_ref : (9, 1, HW)     f32   per-tap boundary masks (batch-independent)
    # s_ref : (Cout, 1)      f32   filter_attention * bn_gamma / sqrt(var + eps)
    # b_ref : (Cout, 1)      f32   bn_beta - bn_mean * bn_scale
    # r_ref : (Cout, HW)     f32   residual, or None (first conv of the block)
    # o_ref : (Cout, HW)     bf16 (first conv) or f32 (second conv)
    # p_ref : (Cout, 1)      f32   mean over HW of the post-ReLU output, or None
    HW = H * W
    xs = x_ref[...].astype(jnp.float32) * ch_ref[...]              # (Cin, HW) f32
    acc = None
    for kh in range(3):
        for kw in range(3):
            t = kh * 3 + kw
            d = (kh - 1) * W + (kw - 1)                            # flat tap offset
            if kh == 1 and kw == 1:
                shifted = xs                                       # center tap: no shift/mask
            else:
                # rolled[:, p] == xs[:, p + d]  (then mask out-of-image positions)
                rolled = pltpu.roll(xs, shift=(-d) % HW, axis=1)
                shifted = rolled * m_ref[t]
            part = jnp.dot(w_ref[t], shifted.astype(jnp.bfloat16),
                           preferred_element_type=jnp.float32)     # (Cout, HW) f32
            acc = part if acc is None else acc + part
    y = acc * s_ref[...] + b_ref[...]
    if r_ref is not None:
        y = y + r_ref[...]
    y = jnp.maximum(y, 0.0)
    o_ref[...] = y.astype(o_ref.dtype)
    if p_ref is not None:
        # adaptive-avg-pool of this conv's output, consumed by the next conv's attention
        p_ref[...] = jnp.mean(y, axis=1, keepdims=True)


def _dynconv_kernel_first(x_ref, ch_ref, w_ref, m_ref, s_ref, b_ref, o_ref, p_ref, *, H, W):
    _dynconv_compute(x_ref, ch_ref, w_ref, m_ref, s_ref, b_ref, None, o_ref, p_ref, H=H, W=W)


def _dynconv_kernel_second(x_ref, ch_ref, w_ref, m_ref, s_ref, b_ref, r_ref, o_ref, *, H, W):
    _dynconv_compute(x_ref, ch_ref, w_ref, m_ref, s_ref, b_ref, r_ref, o_ref, None, H=H, W=W)


def fused_dynconv(x_bf16, ch, wt, masks, scale, bias, residual, *, H, W, emit_pooled):
    """x_bf16 (B,Cin,HW) bf16, ch (B,Cin,1) f32, wt (B,9,Cout,Cin) bf16,
    masks (9,1,HW) f32, scale/bias (B,Cout,1) f32, residual (B,Cout,HW) f32 or None.

    If emit_pooled: returns (out bf16 (B,Cout,HW), pooled f32 (B,Cout,1)).
    Else: returns out f32 (B,Cout,HW)."""
    B, Cin, HW = x_bf16.shape
    Cout = wt.shape[2]

    in_specs = [
        pl.BlockSpec((None, Cin, HW), lambda b: (b, 0, 0)),           # x (bf16)
        pl.BlockSpec((None, Cin, 1), lambda b: (b, 0, 0)),            # channel attention
        pl.BlockSpec((None, 9, Cout, Cin), lambda b: (b, 0, 0, 0)),   # aggregated weight (bf16)
        pl.BlockSpec((9, 1, HW), lambda b: (0, 0, 0)),                # tap masks (shared)
        pl.BlockSpec((None, Cout, 1), lambda b: (b, 0, 0)),           # fused scale
        pl.BlockSpec((None, Cout, 1), lambda b: (b, 0, 0)),           # fused bias
    ]
    args = [x_bf16, ch, wt, masks, scale, bias]

    if emit_pooled:
        assert residual is None
        kernel = functools.partial(_dynconv_kernel_first, H=H, W=W)
        out_shape = (jax.ShapeDtypeStruct((B, Cout, HW), jnp.bfloat16),
                     jax.ShapeDtypeStruct((B, Cout, 1), jnp.float32))
        out_specs = (pl.BlockSpec((None, Cout, HW), lambda b: (b, 0, 0)),
                     pl.BlockSpec((None, Cout, 1), lambda b: (b, 0, 0)))
    else:
        in_specs.append(pl.BlockSpec((None, Cout, HW), lambda b: (b, 0, 0)))   # residual
        args.append(residual)
        kernel = functools.partial(_dynconv_kernel_second, H=H, W=W)
        out_shape = jax.ShapeDtypeStruct((B, Cout, HW), jnp.float32)
        out_specs = pl.BlockSpec((None, Cout, HW), lambda b: (b, 0, 0))

    return pl.pallas_call(
        kernel,
        out_shape=out_shape,
        grid=(B,),
        in_specs=in_specs,
        out_specs=out_specs,
        compiler_params=pltpu.CompilerParams(dimension_semantics=("parallel",)),
    )(*args)


# ---------------------------------------------------------------------------
# JAX glue: ODConv attention heads (tiny GEMMs, left in XLA), weight aggregation
# ---------------------------------------------------------------------------
def odconv_attention(pooled, p):
    """pooled: (B, Cin) adaptive-avg-pooled input.
    Returns channel (B,Cin), filter (B,Cout), spatial (B,9).
    kernel_num == 1 -> kernel attention is the constant 1.0 (skip)."""
    z = pooled @ p["fc_w"].T                                         # 1x1 conv, no bias
    inv = 1.0 / jnp.sqrt(p["att_bn_var"] + 1e-5)                     # BN (eval mode)
    z = (z - p["att_bn_mean"]) * inv * p["att_bn_gamma"] + p["att_bn_beta"]
    z = jnp.maximum(z, 0.0)                                          # ReLU
    ch = jax.nn.sigmoid(z @ p["channel_w"].T + p["channel_b"])       # temperature = 1.0
    fi = jax.nn.sigmoid(z @ p["filter_w"].T + p["filter_b"])
    sp = jax.nn.sigmoid(z @ p["spatial_w"].T + p["spatial_b"])
    return ch, fi, sp


def make_tap_masks(H, W):
    """(9, 1, H*W) float32 0/1 masks: which output positions see an in-image 3x3 tap."""
    i = np.arange(H)[:, None]
    j = np.arange(W)[None, :]
    rows = []
    for kh in range(3):
        for kw in range(3):
            dh, dw = kh - 1, kw - 1
            m = (i + dh >= 0) & (i + dh < H) & (j + dw >= 0) & (j + dw < W)
            rows.append(m.reshape(-1))
    return jnp.asarray(np.stack(rows)[:, None, :].astype(np.float32))


def odconv_bn_relu(x_bf16, pooled, conv_p, bn_p, masks, H, W,
                   residual2d=None, emit_pooled=False):
    """ODConv2d(3x3, kernel_num=1) + BatchNorm2d(eval) + (optional residual) + ReLU.
    x_bf16: (B, Cin, H*W) bf16 activations; pooled: (B, Cin) f32 avg-pool of the input."""
    B, Cin, HW = x_bf16.shape
    Cout = conv_p["weight"].shape[1]
    ch, fi, sp = odconv_attention(pooled, conv_p)

    # aggregate_weight = spatial_att * kernel_att(=1) * weight, laid out tap-major
    w_base = conv_p["weight"][0].reshape(Cout, Cin, 9)               # tap index = kh*3 + kw
    wt = (sp[:, None, None, :] * w_base[None]).transpose(0, 3, 1, 2)  # (B, 9, Cout, Cin)

    bn_s = bn_p["gamma"] / jnp.sqrt(bn_p["var"] + 1e-5)
    bn_t = bn_p["beta"] - bn_p["mean"] * bn_s
    scale = (fi * bn_s[None, :])[:, :, None]                         # filter att fused with BN
    bias = jnp.broadcast_to(bn_t[None, :, None], (B, Cout, 1))

    return fused_dynconv(
        x_bf16,
        ch[:, :, None].astype(jnp.float32),
        wt.astype(jnp.bfloat16),
        masks,
        scale.astype(jnp.float32),
        bias.astype(jnp.float32),
        residual2d,
        H=H, W=W, emit_pooled=emit_pooled)


def basic_block_forward(x, params):
    # out = relu(bn1(conv1(x))) ; out = relu(bn2(conv2(out)) + x)   (downsample=None, stride=1)
    B, C, H, W = x.shape
    x2d = x.reshape(B, C, H * W)                                     # free reshape, NCHW layout kept
    masks = make_tap_masks(H, W)

    # conv1: emits bf16 activations + in-kernel pooled mean for conv2's attention heads
    pooled1 = jnp.mean(x2d, axis=2)
    out1_bf16, pooled2 = odconv_bn_relu(
        x2d.astype(jnp.bfloat16), pooled1, params["conv1"], params["bn1"],
        masks, H, W, emit_pooled=True)

    # conv2: residual add with the block input, f32 output
    out2 = odconv_bn_relu(
        out1_bf16, pooled2[:, :, 0], params["conv2"], params["bn2"],
        masks, H, W, residual2d=x2d)
    return out2.reshape(B, C, H, W)


# ---------------------------------------------------------------------------
# Pure-JAX reference (for numerical sanity check)
# ---------------------------------------------------------------------------
def _ref_odconv(x, p):
    B, Cin, H, W = x.shape
    ch, fi, sp = odconv_attention(jnp.mean(x, axis=(2, 3)), p)
    xs = x * ch[:, :, None, None]
    agg = sp.reshape(B, 1, 1, 3, 3) * p["weight"][0][None]

    def conv_one(xi, wi):
        return lax.conv_general_dilated(
            xi[None], wi, (1, 1), ((1, 1), (1, 1)),
            dimension_numbers=("NCHW", "OIHW", "NCHW"),
            precision=lax.Precision.HIGHEST)[0]

    out = jax.vmap(conv_one)(xs, agg)
    return out * fi[:, :, None, None]


def _ref_bn(x, bn_p):
    s = bn_p["gamma"] / jnp.sqrt(bn_p["var"] + 1e-5)
    t = bn_p["beta"] - bn_p["mean"] * s
    return x * s[None, :, None, None] + t[None, :, None, None]


def ref_basic_block(x, params):
    out = jnp.maximum(_ref_bn(_ref_odconv(x, params["conv1"]), params["bn1"]), 0.0)
    out = _ref_bn(_ref_odconv(out, params["conv2"]), params["bn2"]) + x
    return jnp.maximum(out, 0.0)


# ---------------------------------------------------------------------------
# Deterministic parameter initialization (synthetic; shapes from module __init__)
# ---------------------------------------------------------------------------
def init_odconv_params(key, cin, cout, reduction=0.0625, min_channel=16):
    A = max(int(cin * reduction), min_channel)                       # attention channels
    ks = jax.random.split(key, 9)

    def rn(k, shape, s=0.3):
        return s * jax.random.normal(k, shape, jnp.float32)

    return dict(
        fc_w=rn(ks[0], (A, cin)),                                    # Conv2d(cin, A, 1, bias=False)
        att_bn_gamma=1.0 + 0.1 * jax.random.normal(ks[1], (A,), jnp.float32),
        att_bn_beta=0.1 * jax.random.normal(ks[2], (A,), jnp.float32),
        att_bn_mean=0.1 * jax.random.normal(ks[3], (A,), jnp.float32),
        att_bn_var=1.0 + 0.1 * jax.random.uniform(ks[4], (A,), jnp.float32),
        channel_w=rn(ks[5], (cin, A)), channel_b=jnp.zeros((cin,), jnp.float32),
        filter_w=rn(ks[6], (cout, A)), filter_b=jnp.zeros((cout,), jnp.float32),
        spatial_w=rn(ks[7], (9, A)), spatial_b=jnp.zeros((9,), jnp.float32),
        weight=rn(ks[8], (1, cout, cin, 3, 3)),                      # (kernel_num, out, in, 3, 3)
    )


def init_bn_params(key, c):
    k1, k2, k3, k4 = jax.random.split(key, 4)
    return dict(
        gamma=1.0 + 0.1 * jax.random.normal(k1, (c,), jnp.float32),
        beta=0.1 * jax.random.normal(k2, (c,), jnp.float32),
        mean=0.1 * jax.random.normal(k3, (c,), jnp.float32),
        var=1.0 + 0.1 * jax.random.uniform(k4, (c,), jnp.float32),
    )


if __name__ == "__main__":
    key = jax.random.PRNGKey(0)
    kx, k1, k2, k3, k4 = jax.random.split(key, 5)

    B, C, H, W = 2, 4, 16, 16                                        # inplanes = planes = 4
    x = jax.random.normal(kx, (B, C, H, W), jnp.float32)

    params = dict(
        conv1=init_odconv_params(k1, C, C),
        bn1=init_bn_params(k2, C),
        conv2=init_odconv_params(k3, C, C),
        bn2=init_bn_params(k4, C),
    )

    out = jax.jit(basic_block_forward)(x, params)
    out = jax.block_until_ready(out)
    assert out.shape == (B, C, H, W)

    ref = ref_basic_block(x, params)
    np.testing.assert_allclose(np.asarray(out), np.asarray(ref), rtol=5e-2, atol=5e-2)

    print("KERNEL_OK")
</pallas_src>

<mosaic_0001>
module attributes {stable_mosaic.version = 11 : i64} {
  func.func @_dynconv_kernel_first(%arg0: i32, %arg1: memref<1x4x256xbf16, #tpu.memory_space<vmem>>, %arg2: memref<1x4x1xf32, #tpu.memory_space<vmem>>, %arg3: memref<1x9x4x4xbf16, #tpu.memory_space<vmem>>, %arg4: memref<9x1x256xf32, #tpu.memory_space<vmem>>, %arg5: memref<1x4x1xf32, #tpu.memory_space<vmem>>, %arg6: memref<1x4x1xf32, #tpu.memory_space<vmem>>, %arg7: memref<1x4x256xbf16, #tpu.memory_space<vmem>>, %arg8: memref<1x4x1xf32, #tpu.memory_space<vmem>>) attributes {dimension_semantics = [#tpu.dimension_semantics<parallel>], iteration_bounds = array<i64: 2>, scalar_prefetch = 0 : i64, scratch_operands = 0 : i64, tpu.core_type = #tpu.core_type<tc>, window_params = [{transform_indices = @transform_0, window_bounds = array<i64: 1, 4, 256>}, {transform_indices = @transform_1, window_bounds = array<i64: 1, 4, 1>}, {transform_indices = @transform_2, window_bounds = array<i64: 1, 9, 4, 4>}, {pipeline_mode = #tpu.pipeline_mode<synchronous>, transform_indices = @transform_3, window_bounds = array<i64: 9, 1, 256>}, {transform_indices = @transform_4, window_bounds = array<i64: 1, 4, 1>}, {transform_indices = @transform_5, window_bounds = array<i64: 1, 4, 1>}, {transform_indices = @transform_6, window_bounds = array<i64: 1, 4, 256>}, {transform_indices = @transform_7, window_bounds = array<i64: 1, 4, 1>}]} {
    %c0 = arith.constant 0 : index
    %c0_0 = arith.constant 0 : index
    %c0_1 = arith.constant 0 : index
    %0 = vector.load %arg1[%c0, %c0_0, %c0_1] : memref<1x4x256xbf16, #tpu.memory_space<vmem>>, vector<1x4x256xbf16>
    %1 = vector.shape_cast %0 : vector<1x4x256xbf16> to vector<4x256xbf16>
    %2 = arith.extf %1 : vector<4x256xbf16> to vector<4x256xf32>
    %c0_2 = arith.constant 0 : index
    %c0_3 = arith.constant 0 : index
    %c0_4 = arith.constant 0 : index
    %3 = vector.load %arg2[%c0_2, %c0_3, %c0_4] : memref<1x4x1xf32, #tpu.memory_space<vmem>>, vector<1x4x1xf32>
    %4 = vector.shape_cast %3 : vector<1x4x1xf32> to vector<4x1xf32>
    %5 = vector.broadcast %4 : vector<4x1xf32> to vector<4x256xf32>
    %6 = arith.mulf %2, %5 : vector<4x256xf32>
    %c17_i32 = arith.constant 17 : i32
    %7 = tpu.dynamic_rotate %6 by %c17_i32 dim 1 : vector<4x256xf32>, i32 -> vector<4x256xf32>
    %c0_5 = arith.constant 0 : index
    %c0_6 = arith.constant 0 : index
    %c0_7 = arith.constant 0 : index
    %8 = vector.load %arg4[%c0_5, %c0_6, %c0_7] : memref<9x1x256xf32, #tpu.memory_space<vmem>>, vector<1x1x256xf32>
    %9 = vector.shape_cast %8 : vector<1x1x256xf32> to vector<1x256xf32>
    %10 = vector.broadcast %9 : vector<1x256xf32> to vector<4x256xf32>
    %11 = arith.mulf %7, %10 : vector<4x256xf32>
    %c0_8 = arith.constant 0 : index
    %c0_9 = arith.constant 0 : index
    %c0_10 = arith.constant 0 : index
    %c0_11 = arith.constant 0 : index
    %12 = vector.load %arg3[%c0_8, %c0_9, %c0_10, %c0_11] : memref<1x9x4x4xbf16, #tpu.memory_space<vmem>>, vector<1x1x4x4xbf16>
    %13 = vector.shape_cast %12 : vector<1x1x4x4xbf16> to vector<4x4xbf16>
    %14 = arith.truncf %11 : vector<4x256xf32> to vector<4x256xbf16>
    %cst = arith.constant dense<0.000000e+00> : vector<4x256xf32>
    %15 = tpu.matmul %13, %14, %cst {dimension_numbers = #tpu.dot_dimension_numbers<[1], [0], [0], [1], [0, 0, 1, 1], [], []>} : vector<4x4xbf16>, vector<4x256xbf16>, vector<4x256xf32> -> vector<4x256xf32>
    %c16_i32 = arith.constant 16 : i32
    %16 = tpu.dynamic_rotate %6 by %c16_i32 dim 1 : vector<4x256xf32>, i32 -> vector<4x256xf32>
    %c1 = arith.constant 1 : index
    %c0_12 = arith.constant 0 : index
    %c0_13 = arith.constant 0 : index
    %17 = vector.load %arg4[%c1, %c0_12, %c0_13] : memref<9x1x256xf32, #tpu.memory_space<vmem>>, vector<1x1x256xf32>
    %18 = vector.shape_cast %17 : vector<1x1x256xf32> to vector<1x256xf32>
    %19 = vector.broadcast %18 : vector<1x256xf32> to vector<4x256xf32>
    %20 = arith.mulf %16, %19 : vector<4x256xf32>
    %c0_14 = arith.constant 0 : index
    %c1_15 = arith.constant 1 : index
    %c0_16 = arith.constant 0 : index
    %c0_17 = arith.constant 0 : index
    %21 = vector.load %arg3[%c0_14, %c1_15, %c0_16, %c0_17] : memref<1x9x4x4xbf16, #tpu.memory_space<vmem>>, vector<1x1x4x4xbf16>
    %22 = vector.shape_cast %21 : vector<1x1x4x4xbf16> to vector<4x4xbf16>
    %23 = arith.truncf %20 : vector<4x256xf32> to vector<4x256xbf16>
    %cst_18 = arith.constant dense<0.000000e+00> : vector<4x256xf32>
    %24 = tpu.matmul %22, %23, %cst_18 {dimension_numbers = #tpu.dot_dimension_numbers<[1], [0], [0], [1], [0, 0, 1, 1], [], []>} : vector<4x4xbf16>, vector<4x256xbf16>, vector<4x256xf32> -> vector<4x256xf32>
    %25 = arith.addf %15, %24 : vector<4x256xf32>
    %c15_i32 = arith.constant 15 : i32
    %26 = tpu.dynamic_rotate %6 by %c15_i32 dim 1 : vector<4x256xf32>, i32 -> vector<4x256xf32>
    %c2 = arith.constant 2 : index
    %c0_19 = arith.constant 0 : index
    %c0_20 = arith.constant 0 : index
    %27 = vector.load %arg4[%c2, %c0_19, %c0_20] : memref<9x1x256xf32, #tpu.memory_space<vmem>>, vector<1x1x256xf32>
    %28 = vector.shape_cast %27 : vector<1x1x256xf32> to vector<1x256xf32>
    %29 = vector.broadcast %28 : vector<1x256xf32> to vector<4x256xf32>
    %30 = arith.mulf %26, %29 : vector<4x256xf32>
    %c0_21 = arith.constant 0 : index
    %c2_22 = arith.constant 2 : index
    %c0_23 = arith.constant 0 : index
    %c0_24 = arith.constant 0 : index
    %31 = vector.load %arg3[%c0_21, %c2_22, %c0_23, %c0_24] : memref<1x9x4x4xbf16, #tpu.memory_space<vmem>>, vector<1x1x4x4xbf16>
    %32 = vector.shape_cast %31 : vector<1x1x4x4xbf16> to vector<4x4xbf16>
    %33 = arith.truncf %30 : vector<4x256xf32> to vector<4x256xbf16>
    %cst_25 = arith.constant dense<0.000000e+00> : vector<4x256xf32>
    %34 = tpu.matmul %32, %33, %cst_25 {dimension_numbers = #tpu.dot_dimension_numbers<[1], [0], [0], [1], [0, 0, 1, 1], [], []>} : vector<4x4xbf16>, vector<4x256xbf16>, vector<4x256xf32> -> vector<4x256xf32>
    %35 = arith.addf %25, %34 : vector<4x256xf32>
    %c1_i32 = arith.constant 1 : i32
    %36 = tpu.dynamic_rotate %6 by %c1_i32 dim 1 : vector<4x256xf32>, i32 -> vector<4x256xf32>
    %c3 = arith.constant 3 : index
    %c0_26 = arith.constant 0 : index
    %c0_27 = arith.constant 0 : index
    %37 = vector.load %arg4[%c3, %c0_26, %c0_27] : memref<9x1x256xf32, #tpu.memory_space<vmem>>, vector<1x1x256xf32>
    %38 = vector.shape_cast %37 : vector<1x1x256xf32> to vector<1x256xf32>
    %39 = vector.broadcast %38 : vector<1x256xf32> to vector<4x256xf32>
    %40 = arith.mulf %36, %39 : vector<4x256xf32>
    %c0_28 = arith.constant 0 : index
    %c3_29 = arith.constant 3 : index
    %c0_30 = arith.constant 0 : index
    %c0_31 = arith.constant 0 : index
    %41 = vector.load %arg3[%c0_28, %c3_29, %c0_30, %c0_31] : memref<1x9x4x4xbf16, #tpu.memory_space<vmem>>, vector<1x1x4x4xbf16>
    %42 = vector.shape_cast %41 : vector<1x1x4x4xbf16> to vector<4x4xbf16>
    %43 = arith.truncf %40 : vector<4x256xf32> to vector<4x256xbf16>
    %cst_32 = arith.constant dense<0.000000e+00> : vector<4x256xf32>
    %44 = tpu.matmul %42, %43, %cst_32 {dimension_numbers = #tpu.dot_dimension_numbers<[1], [0], [0], [1], [0, 0, 1, 1], [], []>} : vector<4x4xbf16>, vector<4x256xbf16>, vector<4x256xf32> -> vector<4x256xf32>
    %45 = arith.addf %35, %44 : vector<4x256xf32>
    %c0_33 = arith.constant 0 : index
    %c4 = arith.constant 4 : index
    %c0_34 = arith.constant 0 : index
    %c0_35 = arith.constant 0 : index
    %46 = vector.load %arg3[%c0_33, %c4, %c0_34, %c0_35] : memref<1x9x4x4xbf16, #tpu.memory_space<vmem>>, vector<1x1x4x4xbf16>
    %47 = vector.shape_cast %46 : vector<1x1x4x4xbf16> to vector<4x4xbf16>
    %48 = arith.truncf %6 : vector<4x256xf32> to vector<4x256xbf16>
    %cst_36 = arith.constant dense<0.000000e+00> : vector<4x256xf32>
    %49 = tpu.matmul %47, %48, %cst_36 {dimension_numbers = #tpu.dot_dimension_numbers<[1], [0], [0], [1], [0, 0, 1, 1], [], []>} : vector<4x4xbf16>, vector<4x256xbf16>, vector<4x256xf32> -> vector<4x256xf32>
    %50 = arith.addf %45, %49 : vector<4x256xf32>
    %c255_i32 = arith.constant 255 : i32
    %51 = tpu.dynamic_rotate %6 by %c255_i32 dim 1 : vector<4x256xf32>, i32 -> vector<4x256xf32>
    %c5 = arith.constant 5 : index
    %c0_37 = arith.constant 0 : index
    %c0_38 = arith.constant 0 : index
    %52 = vector.load %arg4[%c5, %c0_37, %c0_38] : memref<9x1x256xf32, #tpu.memory_space<vmem>>, vector<1x1x256xf32>
    %53 = vector.shape_cast %52 : vector<1x1x256xf32> to vector<1x256xf32>
    %54 = vector.broadcast %53 : vector<1x256xf32> to vector<4x256xf32>
    %55 = arith.mulf %51, %54 : vector<4x256xf32>
    %c0_39 = arith.constant 0 : index
    %c5_40 = arith.constant 5 : index
    %c0_41 = arith.constant 0 : index
    %c0_42 = arith.constant 0 : index
    %56 = vector.load %arg3[%c0_39, %c5_40, %c0_41, %c0_42] : memref<1x9x4x4xbf16, #tpu.memory_space<vmem>>, vector<1x1x4x4xbf16>
    %57 = vector.shape_cast %56 : vector<1x1x4x4xbf16> to vector<4x4xbf16>
    %58 = arith.truncf %55 : vector<4x256xf32> to vector<4x256xbf16>
    %cst_43 = arith.constant dense<0.000000e+00> : vector<4x256xf32>
    %59 = tpu.matmul %57, %58, %cst_43 {dimension_numbers = #tpu.dot_dimension_numbers<[1], [0], [0], [1], [0, 0, 1, 1], [], []>} : vector<4x4xbf16>, vector<4x256xbf16>, vector<4x256xf32> -> vector<4x256xf32>
    %60 = arith.addf %50, %59 : vector<4x256xf32>
    %c241_i32 = arith.constant 241 : i32
    %61 = tpu.dynamic_rotate %6 by %c241_i32 dim 1 : vector<4x256xf32>, i32 -> vector<4x256xf32>
    %c6 = arith.constant 6 : index
    %c0_44 = arith.constant 0 : index
    %c0_45 = arith.constant 0 : index
    %62 = vector.load %arg4[%c6, %c0_44, %c0_45] : memref<9x1x256xf32, #tpu.memory_space<vmem>>, vector<1x1x256xf32>
    %63 = vector.shape_cast %62 : vector<1x1x256xf32> to vector<1x256xf32>
    %64 = vector.broadcast %63 : vector<1x256xf32> to vector<4x256xf32>
    %65 = arith.mulf %61, %64 : vector<4x256xf32>
    %c0_46 = arith.constant 0 : index
    %c6_47 = arith.constant 6 : index
    %c0_48 = arith.constant 0 : index
    %c0_49 = arith.constant 0 : index
    %66 = vector.load %arg3[%c0_46, %c6_47, %c0_48, %c0_49] : memref<1x9x4x4xbf16, #tpu.memory_space<vmem>>, vector<1x1x4x4xbf16>
    %67 = vector.shape_cast %66 : vector<1x1x4x4xbf16> to vector<4x4xbf16>
    %68 = arith.truncf %65 : vector<4x256xf32> to vector<4x256xbf16>
    %cst_50 = arith.constant dense<0.000000e+00> : vector<4x256xf32>
    %69 = tpu.matmul %67, %68, %cst_50 {dimension_numbers = #tpu.dot_dimension_numbers<[1], [0], [0], [1], [0, 0, 1, 1], [], []>} : vector<4x4xbf16>, vector<4x256xbf16>, vector<4x256xf32> -> vector<4x256xf32>
    %70 = arith.addf %60, %69 : vector<4x256xf32>
    %c240_i32 = arith.constant 240 : i32
    %71 = tpu.dynamic_rotate %6 by %c240_i32 dim 1 : vector<4x256xf32>, i32 -> vector<4x256xf32>
    %c7 = arith.constant 7 : index
    %c0_51 = arith.constant 0 : index
    %c0_52 = arith.constant 0 : index
    %72 = vector.load %arg4[%c7, %c0_51, %c0_52] : memref<9x1x256xf32, #tpu.memory_space<vmem>>, vector<1x1x256xf32>
    %73 = vector.shape_cast %72 : vector<1x1x256xf32> to vector<1x256xf32>
    %74 = vector.broadcast %73 : vector<1x256xf32> to vector<4x256xf32>
    %75 = arith.mulf %71, %74 : vector<4x256xf32>
    %c0_53 = arith.constant 0 : index
    %c7_54 = arith.constant 7 : index
    %c0_55 = arith.constant 0 : index
    %c0_56 = arith.constant 0 : index
    %76 = vector.load %arg3[%c0_53, %c7_54, %c0_55, %c0_56] : memref<1x9x4x4xbf16, #tpu.memory_space<vmem>>, vector<1x1x4x4xbf16>
    %77 = vector.shape_cast %76 : vector<1x1x4x4xbf16> to vector<4x4xbf16>
    %78 = arith.truncf %75 : vector<4x256xf32> to vector<4x256xbf16>
    %cst_57 = arith.constant dense<0.000000e+00> : vector<4x256xf32>
    %79 = tpu.matmul %77, %78, %cst_57 {dimension_numbers = #tpu.dot_dimension_numbers<[1], [0], [0], [1], [0, 0, 1, 1], [], []>} : vector<4x4xbf16>, vector<4x256xbf16>, vector<4x256xf32> -> vector<4x256xf32>
    %80 = arith.addf %70, %79 : vector<4x256xf32>
    %c239_i32 = arith.constant 239 : i32
    %81 = tpu.dynamic_rotate %6 by %c239_i32 dim 1 : vector<4x256xf32>, i32 -> vector<4x256xf32>
    %c8 = arith.constant 8 : index
    %c0_58 = arith.constant 0 : index
    %c0_59 = arith.constant 0 : index
    %82 = vector.load %arg4[%c8, %c0_58, %c0_59] : memref<9x1x256xf32, #tpu.memory_space<vmem>>, vector<1x1x256xf32>
    %83 = vector.shape_cast %82 : vector<1x1x256xf32> to vector<1x256xf32>
    %84 = vector.broadcast %83 : vector<1x256xf32> to vector<4x256xf32>
    %85 = arith.mulf %81, %84 : vector<4x256xf32>
    %c0_60 = arith.constant 0 : index
    %c8_61 = arith.constant 8 : index
    %c0_62 = arith.constant 0 : index
    %c0_63 = arith.constant 0 : index
    %86 = vector.load %arg3[%c0_60, %c8_61, %c0_62, %c0_63] : memref<1x9x4x4xbf16, #tpu.memory_space<vmem>>, vector<1x1x4x4xbf16>
    %87 = vector.shape_cast %86 : vector<1x1x4x4xbf16> to vector<4x4xbf16>
    %88 = arith.truncf %85 : vector<4x256xf32> to vector<4x256xbf16>
    %cst_64 = arith.constant dense<0.000000e+00> : vector<4x256xf32>
    %89 = tpu.matmul %87, %88, %cst_64 {dimension_numbers = #tpu.dot_dimension_numbers<[1], [0], [0], [1], [0, 0, 1, 1], [], []>} : vector<4x4xbf16>, vector<4x256xbf16>, vector<4x256xf32> -> vector<4x256xf32>
    %90 = arith.addf %80, %89 : vector<4x256xf32>
    %c0_65 = arith.constant 0 : index
    %c0_66 = arith.constant 0 : index
    %c0_67 = arith.constant 0 : index
    %91 = vector.load %arg5[%c0_65, %c0_66, %c0_67] : memref<1x4x1xf32, #tpu.memory_space<vmem>>, vector<1x4x1xf32>
    %92 = vector.shape_cast %91 : vector<1x4x1xf32> to vector<4x1xf32>
    %93 = vector.broadcast %92 : vector<4x1xf32> to vector<4x256xf32>
    %94 = arith.mulf %90, %93 : vector<4x256xf32>
    %c0_68 = arith.constant 0 : index
    %c0_69 = arith.constant 0 : index
    %c0_70 = arith.constant 0 : index
    %95 = vector.load %arg6[%c0_68, %c0_69, %c0_70] : memref<1x4x1xf32, #tpu.memory_space<vmem>>, vector<1x4x1xf32>
    %96 = vector.shape_cast %95 : vector<1x4x1xf32> to vector<4x1xf32>
    %97 = vector.broadcast %96 : vector<4x1xf32> to vector<4x256xf32>
    %98 = arith.addf %94, %97 : vector<4x256xf32>
    %cst_71 = arith.constant 0.000000e+00 : f32
    %99 = vector.broadcast %cst_71 : f32 to vector<4x256xf32>
    %100 = arith.maximumf %98, %99 : vector<4x256xf32>
    %101 = arith.truncf %100 : vector<4x256xf32> to vector<4x256xbf16>
    %c0_72 = arith.constant 0 : index
    %c0_73 = arith.constant 0 : index
    %c0_74 = arith.constant 0 : index
    %102 = vector.load %arg7[%c0_72, %c0_73, %c0_74] : memref<1x4x256xbf16, #tpu.memory_space<vmem>>, vector<1x4x256xbf16>
    %103 = vector.shape_cast %102 : vector<1x4x256xbf16> to vector<4x256xbf16>
    %104 = vector.shape_cast %101 : vector<4x256xbf16> to vector<1x4x256xbf16>
    tpu.vector_store %arg7[%c0_72, %c0_73, %c0_74], %104 {strides = array<i32>} : memref<1x4x256xbf16, #tpu.memory_space<vmem>>, vector<1x4x256xbf16>,
    %cst_75 = arith.constant dense<0.000000e+00> : vector<4xf32>
    %105 = vector.multi_reduction <add>, %100, %cst_75 [1] : vector<4x256xf32> to vector<4xf32>
    %106 = vector.shape_cast %105 : vector<4xf32> to vector<4x1xf32>
    %cst_76 = arith.constant 2.560000e+02 : f32
    %107 = vector.broadcast %cst_76 : f32 to vector<4x1xf32>
    %108 = arith.divf %106, %107 : vector<4x1xf32>
    %c0_77 = arith.constant 0 : index
    %c0_78 = arith.constant 0 : index
    %c0_79 = arith.constant 0 : index
    %109 = vector.load %arg8[%c0_77, %c0_78, %c0_79] : memref<1x4x1xf32, #tpu.memory_space<vmem>>, vector<1x4x1xf32>
    %110 = vector.shape_cast %109 : vector<1x4x1xf32> to vector<4x1xf32>
    %111 = vector.shape_cast %108 : vector<4x1xf32> to vector<1x4x1xf32>
    tpu.vector_store %arg8[%c0_77, %c0_78, %c0_79], %111 {strides = array<i32>} : memref<1x4x1xf32, #tpu.memory_space<vmem>>, vector<1x4x1xf32>,
    return
  }
  func.func @transform_0(%arg0: i32) -> (i32, i32, i32) {
    %c0_i32 = arith.constant 0 : i32
    %c0_i32_0 = arith.constant 0 : i32
    %c0_i32_1 = arith.constant 0 : i32
    return %arg0, %c0_i32, %c0_i32_0 : i32, i32, i32
  }
  func.func @transform_1(%arg0: i32) -> (i32, i32, i32) {
    %c0_i32 = arith.constant 0 : i32
    %c0_i32_0 = arith.constant 0 : i32
    %c0_i32_1 = arith.constant 0 : i32
    return %arg0, %c0_i32, %c0_i32_0 : i32, i32, i32
  }
  func.func @transform_2(%arg0: i32) -> (i32, i32, i32, i32) {
    %c0_i32 = arith.constant 0 : i32
    %c0_i32_0 = arith.constant 0 : i32
    %c0_i32_1 = arith.constant 0 : i32
    %c0_i32_2 = arith.constant 0 : i32
    return %arg0, %c0_i32, %c0_i32_0, %c0_i32_1 : i32, i32, i32, i32
  }
  func.func @transform_3(%arg0: i32) -> (i32, i32, i32) {
    %c0_i32 = arith.constant 0 : i32
    %c0_i32_0 = arith.constant 0 : i32
    %c0_i32_1 = arith.constant 0 : i32
    %c0_i32_2 = arith.constant 0 : i32
    return %c0_i32, %c0_i32_0, %c0_i32_1 : i32, i32, i32
  }
  func.func @transform_4(%arg0: i32) -> (i32, i32, i32) {
    %c0_i32 = arith.constant 0 : i32
    %c0_i32_0 = arith.constant 0 : i32
    %c0_i32_1 = arith.constant 0 : i32
    return %arg0, %c0_i32, %c0_i32_0 : i32, i32, i32
  }
  func.func @transform_5(%arg0: i32) -> (i32, i32, i32) {
    %c0_i32 = arith.constant 0 : i32
    %c0_i32_0 = arith.constant 0 : i32
    %c0_i32_1 = arith.constant 0 : i32
    return %arg0, %c0_i32, %c0_i32_0 : i32, i32, i32
  }
  func.func @transform_6(%arg0: i32) -> (i32, i32, i32) {
    %c0_i32 = arith.constant 0 : i32
    %c0_i32_0 = arith.constant 0 : i32
    %c0_i32_1 = arith.constant 0 : i32
    return %arg0, %c0_i32, %c0_i32_0 : i32, i32, i32
  }
  func.func @transform_7(%arg0: i32) -> (i32, i32, i32) {
    %c0_i32 = arith.constant 0 : i32
    %c0_i32_0 = arith.constant 0 : i32
    %c0_i32_1 = arith.constant 0 : i32
    return %arg0, %c0_i32, %c0_i32_0 : i32, i32, i32
  }
}

module attributes {stable_mosaic.version = 11 : i64} {
  func.func @_dynconv_kernel_second(%arg0: i32, %arg1: memref<1x4x256xbf16, #tpu.memory_space<vmem>>, %arg2: memref<1x4x1xf32, #tpu.memory_space<vmem>>, %arg3: memref<1x9x4x4xbf16, #tpu.memory_space<vmem>>, %arg4: memref<9x1x256xf32, #tpu.memory_space<vmem>>, %arg5: memref<1x4x1xf32, #tpu.memory_space<vmem>>, %arg6: memref<1x4x1xf32, #tpu.memory_space<vmem>>, %arg7: memref<1x4x256xf32, #tpu.memory_space<vmem>>, %arg8: memref<1x4x256xf32, #tpu.memory_space<vmem>>) attributes {dimension_semantics = [#tpu.dimension_semantics<parallel>], iteration_bounds = array<i64: 2>, scalar_prefetch = 0 : i64, scratch_operands = 0 : i64, tpu.core_type = #tpu.core_type<tc>, window_params = [{transform_indices = @transform_0, window_bounds = array<i64: 1, 4, 256>}, {transform_indices = @transform_1, window_bounds = array<i64: 1, 4, 1>}, {transform_indices = @transform_2, window_bounds = array<i64: 1, 9, 4, 4>}, {pipeline_mode = #tpu.pipeline_mode<synchronous>, transform_indices = @transform_3, window_bounds = array<i64: 9, 1, 256>}, {transform_indices = @transform_4, window_bounds = array<i64: 1, 4, 1>}, {transform_indices = @transform_5, window_bounds = array<i64: 1, 4, 1>}, {transform_indices = @transform_6, window_bounds = array<i64: 1, 4, 256>}, {transform_indices = @transform_7, window_bounds = array<i64: 1, 4, 256>}]} {
    %c0 = arith.constant 0 : index
    %c0_0 = arith.constant 0 : index
    %c0_1 = arith.constant 0 : index
    %0 = vector.load %arg1[%c0, %c0_0, %c0_1] : memref<1x4x256xbf16, #tpu.memory_space<vmem>>, vector<1x4x256xbf16>
    %1 = vector.shape_cast %0 : vector<1x4x256xbf16> to vector<4x256xbf16>
    %2 = arith.extf %1 : vector<4x256xbf16> to vector<4x256xf32>
    %c0_2 = arith.constant 0 : index
    %c0_3 = arith.constant 0 : index
    %c0_4 = arith.constant 0 : index
    %3 = vector.load %arg2[%c0_2, %c0_3, %c0_4] : memref<1x4x1xf32, #tpu.memory_space<vmem>>, vector<1x4x1xf32>
    %4 = vector.shape_cast %3 : vector<1x4x1xf32> to vector<4x1xf32>
    %5 = vector.broadcast %4 : vector<4x1xf32> to vector<4x256xf32>
    %6 = arith.mulf %2, %5 : vector<4x256xf32>
    %c17_i32 = arith.constant 17 : i32
    %7 = tpu.dynamic_rotate %6 by %c17_i32 dim 1 : vector<4x256xf32>, i32 -> vector<4x256xf32>
    %c0_5 = arith.constant 0 : index
    %c0_6 = arith.constant 0 : index
    %c0_7 = arith.constant 0 : index
    %8 = vector.load %arg4[%c0_5, %c0_6, %c0_7] : memref<9x1x256xf32, #tpu.memory_space<vmem>>, vector<1x1x256xf32>
    %9 = vector.shape_cast %8 : vector<1x1x256xf32> to vector<1x256xf32>
    %10 = vector.broadcast %9 : vector<1x256xf32> to vector<4x256xf32>
    %11 = arith.mulf %7, %10 : vector<4x256xf32>
    %c0_8 = arith.constant 0 : index
    %c0_9 = arith.constant 0 : index
    %c0_10 = arith.constant 0 : index
    %c0_11 = arith.constant 0 : index
    %12 = vector.load %arg3[%c0_8, %c0_9, %c0_10, %c0_11] : memref<1x9x4x4xbf16, #tpu.memory_space<vmem>>, vector<1x1x4x4xbf16>
    %13 = vector.shape_cast %12 : vector<1x1x4x4xbf16> to vector<4x4xbf16>
    %14 = arith.truncf %11 : vector<4x256xf32> to vector<4x256xbf16>
    %cst = arith.constant dense<0.000000e+00> : vector<4x256xf32>
    %15 = tpu.matmul %13, %14, %cst {dimension_numbers = #tpu.dot_dimension_numbers<[1], [0], [0], [1], [0, 0, 1, 1], [], []>} : vector<4x4xbf16>, vector<4x256xbf16>, vector<4x256xf32> -> vector<4x256xf32>
    %c16_i32 = arith.constant 16 : i32
    %16 = tpu.dynamic_rotate %6 by %c16_i32 dim 1 : vector<4x256xf32>, i32 -> vector<4x256xf32>
    %c1 = arith.constant 1 : index
    %c0_12 = arith.constant 0 : index
    %c0_13 = arith.constant 0 : index
    %17 = vector.load %arg4[%c1, %c0_12, %c0_13] : memref<9x1x256xf32, #tpu.memory_space<vmem>>, vector<1x1x256xf32>
    %18 = vector.shape_cast %17 : vector<1x1x256xf32> to vector<1x256xf32>
    %19 = vector.broadcast %18 : vector<1x256xf32> to vector<4x256xf32>
    %20 = arith.mulf %16, %19 : vector<4x256xf32>
    %c0_14 = arith.constant 0 : index
    %c1_15 = arith.constant 1 : index
    %c0_16 = arith.constant 0 : index
    %c0_17 = arith.constant 0 : index
    %21 = vector.load %arg3[%c0_14, %c1_15, %c0_16, %c0_17] : memref<1x9x4x4xbf16, #tpu.memory_space<vmem>>, vector<1x1x4x4xbf16>
    %22 = vector.shape_cast %21 : vector<1x1x4x4xbf16> to vector<4x4xbf16>
    %23 = arith.truncf %20 : vector<4x256xf32> to vector<4x256xbf16>
    %cst_18 = arith.constant dense<0.000000e+00> : vector<4x256xf32>
    %24 = tpu.matmul %22, %23, %cst_18 {dimension_numbers = #tpu.dot_dimension_numbers<[1], [0], [0], [1], [0, 0, 1, 1], [], []>} : vector<4x4xbf16>, vector<4x256xbf16>, vector<4x256xf32> -> vector<4x256xf32>
    %25 = arith.addf %15, %24 : vector<4x256xf32>
    %c15_i32 = arith.constant 15 : i32
    %26 = tpu.dynamic_rotate %6 by %c15_i32 dim 1 : vector<4x256xf32>, i32 -> vector<4x256xf32>
    %c2 = arith.constant 2 : index
    %c0_19 = arith.constant 0 : index
    %c0_20 = arith.constant 0 : index
    %27 = vector.load %arg4[%c2, %c0_19, %c0_20] : memref<9x1x256xf32, #tpu.memory_space<vmem>>, vector<1x1x256xf32>
    %28 = vector.shape_cast %27 : vector<1x1x256xf32> to vector<1x256xf32>
    %29 = vector.broadcast %28 : vector<1x256xf32> to vector<4x256xf32>
    %30 = arith.mulf %26, %29 : vector<4x256xf32>
    %c0_21 = arith.constant 0 : index
    %c2_22 = arith.constant 2 : index
    %c0_23 = arith.constant 0 : index
    %c0_24 = arith.constant 0 : index
    %31 = vector.load %arg3[%c0_21, %c2_22, %c0_23, %c0_24] : memref<1x9x4x4xbf16, #tpu.memory_space<vmem>>, vector<1x1x4x4xbf16>
    %32 = vector.shape_cast %31 : vector<1x1x4x4xbf16> to vector<4x4xbf16>
    %33 = arith.truncf %30 : vector<4x256xf32> to vector<4x256xbf16>
    %cst_25 = arith.constant dense<0.000000e+00> : vector<4x256xf32>
    %34 = tpu.matmul %32, %33, %cst_25 {dimension_numbers = #tpu.dot_dimension_numbers<[1], [0], [0], [1], [0, 0, 1, 1], [], []>} : vector<4x4xbf16>, vector<4x256xbf16>, vector<4x256xf32> -> vector<4x256xf32>
    %35 = arith.addf %25, %34 : vector<4x256xf32>
    %c1_i32 = arith.constant 1 : i32
    %36 = tpu.dynamic_rotate %6 by %c1_i32 dim 1 : vector<4x256xf32>, i32 -> vector<4x256xf32>
    %c3 = arith.constant 3 : index
    %c0_26 = arith.constant 0 : index
    %c0_27 = arith.constant 0 : index
    %37 = vector.load %arg4[%c3, %c0_26, %c0_27] : memref<9x1x256xf32, #tpu.memory_space<vmem>>, vector<1x1x256xf32>
    %38 = vector.shape_cast %37 : vector<1x1x256xf32> to vector<1x256xf32>
    %39 = vector.broadcast %38 : vector<1x256xf32> to vector<4x256xf32>
    %40 = arith.mulf %36, %39 : vector<4x256xf32>
    %c0_28 = arith.constant 0 : index
    %c3_29 = arith.constant 3 : index
    %c0_30 = arith.constant 0 : index
    %c0_31 = arith.constant 0 : index
    %41 = vector.load %arg3[%c0_28, %c3_29, %c0_30, %c0_31] : memref<1x9x4x4xbf16, #tpu.memory_space<vmem>>, vector<1x1x4x4xbf16>
    %42 = vector.shape_cast %41 : vector<1x1x4x4xbf16> to vector<4x4xbf16>
    %43 = arith.truncf %40 : vector<4x256xf32> to vector<4x256xbf16>
    %cst_32 = arith.constant dense<0.000000e+00> : vector<4x256xf32>
    %44 = tpu.matmul %42, %43, %cst_32 {dimension_numbers = #tpu.dot_dimension_numbers<[1], [0], [0], [1], [0, 0, 1, 1], [], []>} : vector<4x4xbf16>, vector<4x256xbf16>, vector<4x256xf32> -> vector<4x256xf32>
    %45 = arith.addf %35, %44 : vector<4x256xf32>
    %c0_33 = arith.constant 0 : index
    %c4 = arith.constant 4 : index
    %c0_34 = arith.constant 0 : index
    %c0_35 = arith.constant 0 : index
    %46 = vector.load %arg3[%c0_33, %c4, %c0_34, %c0_35] : memref<1x9x4x4xbf16, #tpu.memory_space<vmem>>, vector<1x1x4x4xbf16>
    %47 = vector.shape_cast %46 : vector<1x1x4x4xbf16> to vector<4x4xbf16>
    %48 = arith.truncf %6 : vector<4x256xf32> to vector<4x256xbf16>
    %cst_36 = arith.constant dense<0.000000e+00> : vector<4x256xf32>
    %49 = tpu.matmul %47, %48, %cst_36 {dimension_numbers = #tpu.dot_dimension_numbers<[1], [0], [0], [1], [0, 0, 1, 1], [], []>} : vector<4x4xbf16>, vector<4x256xbf16>, vector<4x256xf32> -> vector<4x256xf32>
    %50 = arith.addf %45, %49 : vector<4x256xf32>
    %c255_i32 = arith.constant 255 : i32
    %51 = tpu.dynamic_rotate %6 by %c255_i32 dim 1 : vector<4x256xf32>, i32 -> vector<4x256xf32>
    %c5 = arith.constant 5 : index
    %c0_37 = arith.constant 0 : index
    %c0_38 = arith.constant 0 : index
    %52 = vector.load %arg4[%c5, %c0_37, %c0_38] : memref<9x1x256xf32, #tpu.memory_space<vmem>>, vector<1x1x256xf32>
    %53 = vector.shape_cast %52 : vector<1x1x256xf32> to vector<1x256xf32>
    %54 = vector.broadcast %53 : vector<1x256xf32> to vector<4x256xf32>
    %55 = arith.mulf %51, %54 : vector<4x256xf32>
    %c0_39 = arith.constant 0 : index
    %c5_40 = arith.constant 5 : index
    %c0_41 = arith.constant 0 : index
    %c0_42 = arith.constant 0 : index
    %56 = vector.load %arg3[%c0_39, %c5_40, %c0_41, %c0_42] : memref<1x9x4x4xbf16, #tpu.memory_space<vmem>>, vector<1x1x4x4xbf16>
    %57 = vector.shape_cast %56 : vector<1x1x4x4xbf16> to vector<4x4xbf16>
    %58 = arith.truncf %55 : vector<4x256xf32> to vector<4x256xbf16>
    %cst_43 = arith.constant dense<0.000000e+00> : vector<4x256xf32>
    %59 = tpu.matmul %57, %58, %cst_43 {dimension_numbers = #tpu.dot_dimension_numbers<[1], [0], [0], [1], [0, 0, 1, 1], [], []>} : vector<4x4xbf16>, vector<4x256xbf16>, vector<4x256xf32> -> vector<4x256xf32>
    %60 = arith.addf %50, %59 : vector<4x256xf32>
    %c241_i32 = arith.constant 241 : i32
    %61 = tpu.dynamic_rotate %6 by %c241_i32 dim 1 : vector<4x256xf32>, i32 -> vector<4x256xf32>
    %c6 = arith.constant 6 : index
    %c0_44 = arith.constant 0 : index
    %c0_45 = arith.constant 0 : index
    %62 = vector.load %arg4[%c6, %c0_44, %c0_45] : memref<9x1x256xf32, #tpu.memory_space<vmem>>, vector<1x1x256xf32>
    %63 = vector.shape_cast %62 : vector<1x1x256xf32> to vector<1x256xf32>
    %64 = vector.broadcast %63 : vector<1x256xf32> to vector<4x256xf32>
    %65 = arith.mulf %61, %64 : vector<4x256xf32>
    %c0_46 = arith.constant 0 : index
    %c6_47 = arith.constant 6 : index
    %c0_48 = arith.constant 0 : index
    %c0_49 = arith.constant 0 : index
    %66 = vector.load %arg3[%c0_46, %c6_47, %c0_48, %c0_49] : memref<1x9x4x4xbf16, #tpu.memory_space<vmem>>, vector<1x1x4x4xbf16>
    %67 = vector.shape_cast %66 : vector<1x1x4x4xbf16> to vector<4x4xbf16>
    %68 = arith.truncf %65 : vector<4x256xf32> to vector<4x256xbf16>
    %cst_50 = arith.constant dense<0.000000e+00> : vector<4x256xf32>
    %69 = tpu.matmul %67, %68, %cst_50 {dimension_numbers = #tpu.dot_dimension_numbers<[1], [0], [0], [1], [0, 0, 1, 1], [], []>} : vector<4x4xbf16>, vector<4x256xbf16>, vector<4x256xf32> -> vector<4x256xf32>
    %70 = arith.addf %60, %69 : vector<4x256xf32>
    %c240_i32 = arith.constant 240 : i32
    %71 = tpu.dynamic_rotate %6 by %c240_i32 dim 1 : vector<4x256xf32>, i32 -> vector<4x256xf32>
    %c7 = arith.constant 7 : index
    %c0_51 = arith.constant 0 : index
    %c0_52 = arith.constant 0 : index
    %72 = vector.load %arg4[%c7, %c0_51, %c0_52] : memref<9x1x256xf32, #tpu.memory_space<vmem>>, vector<1x1x256xf32>
    %73 = vector.shape_cast %72 : vector<1x1x256xf32> to vector<1x256xf32>
    %74 = vector.broadcast %73 : vector<1x256xf32> to vector<4x256xf32>
    %75 = arith.mulf %71, %74 : vector<4x256xf32>
    %c0_53 = arith.constant 0 : index
    %c7_54 = arith.constant 7 : index
    %c0_55 = arith.constant 0 : index
    %c0_56 = arith.constant 0 : index
    %76 = vector.load %arg3[%c0_53, %c7_54, %c0_55, %c0_56] : memref<1x9x4x4xbf16, #tpu.memory_space<vmem>>, vector<1x1x4x4xbf16>
    %77 = vector.shape_cast %76 : vector<1x1x4x4xbf16> to vector<4x4xbf16>
    %78 = arith.truncf %75 : vector<4x256xf32> to vector<4x256xbf16>
    %cst_57 = arith.constant dense<0.000000e+00> : vector<4x256xf32>
    %79 = tpu.matmul %77, %78, %cst_57 {dimension_numbers = #tpu.dot_dimension_numbers<[1], [0], [0], [1], [0, 0, 1, 1], [], []>} : vector<4x4xbf16>, vector<4x256xbf16>, vector<4x256xf32> -> vector<4x256xf32>
    %80 = arith.addf %70, %79 : vector<4x256xf32>
    %c239_i32 = arith.constant 239 : i32
    %81 = tpu.dynamic_rotate %6 by %c239_i32 dim 1 : vector<4x256xf32>, i32 -> vector<4x256xf32>
    %c8 = arith.constant 8 : index
    %c0_58 = arith.constant 0 : index
    %c0_59 = arith.constant 0 : index
    %82 = vector.load %arg4[%c8, %c0_58, %c0_59] : memref<9x1x256xf32, #tpu.memory_space<vmem>>, vector<1x1x256xf32>
    %83 = vector.shape_cast %82 : vector<1x1x256xf32> to vector<1x256xf32>
    %84 = vector.broadcast %83 : vector<1x256xf32> to vector<4x256xf32>
    %85 = arith.mulf %81, %84 : vector<4x256xf32>
    %c0_60 = arith.constant 0 : index
    %c8_61 = arith.constant 8 : index
    %c0_62 = arith.constant 0 : index
    %c0_63 = arith.constant 0 : index
    %86 = vector.load %arg3[%c0_60, %c8_61, %c0_62, %c0_63] : memref<1x9x4x4xbf16, #tpu.memory_space<vmem>>, vector<1x1x4x4xbf16>
    %87 = vector.shape_cast %86 : vector<1x1x4x4xbf16> to vector<4x4xbf16>
    %88 = arith.truncf %85 : vector<4x256xf32> to vector<4x256xbf16>
    %cst_64 = arith.constant dense<0.000000e+00> : vector<4x256xf32>
    %89 = tpu.matmul %87, %88, %cst_64 {dimension_numbers = #tpu.dot_dimension_numbers<[1], [0], [0], [1], [0, 0, 1, 1], [], []>} : vector<4x4xbf16>, vector<4x256xbf16>, vector<4x256xf32> -> vector<4x256xf32>
    %90 = arith.addf %80, %89 : vector<4x256xf32>
    %c0_65 = arith.constant 0 : index
    %c0_66 = arith.constant 0 : index
    %c0_67 = arith.constant 0 : index
    %91 = vector.load %arg5[%c0_65, %c0_66, %c0_67] : memref<1x4x1xf32, #tpu.memory_space<vmem>>, vector<1x4x1xf32>
    %92 = vector.shape_cast %91 : vector<1x4x1xf32> to vector<4x1xf32>
    %93 = vector.broadcast %92 : vector<4x1xf32> to vector<4x256xf32>
    %94 = arith.mulf %90, %93 : vector<4x256xf32>
    %c0_68 = arith.constant 0 : index
    %c0_69 = arith.constant 0 : index
    %c0_70 = arith.constant 0 : index
    %95 = vector.load %arg6[%c0_68, %c0_69, %c0_70] : memref<1x4x1xf32, #tpu.memory_space<vmem>>, vector<1x4x1xf32>
    %96 = vector.shape_cast %95 : vector<1x4x1xf32> to vector<4x1xf32>
    %97 = vector.broadcast %96 : vector<4x1xf32> to vector<4x256xf32>
    %98 = arith.addf %94, %97 : vector<4x256xf32>
    %c0_71 = arith.constant 0 : index
    %c0_72 = arith.constant 0 : index
    %c0_73 = arith.constant 0 : index
    %99 = vector.load %arg7[%c0_71, %c0_72, %c0_73] : memref<1x4x256xf32, #tpu.memory_space<vmem>>, vector<1x4x256xf32>
    %100 = vector.shape_cast %99 : vector<1x4x256xf32> to vector<4x256xf32>
    %101 = arith.addf %98, %100 : vector<4x256xf32>
    %cst_74 = arith.constant 0.000000e+00 : f32
    %102 = vector.broadcast %cst_74 : f32 to vector<4x256xf32>
    %103 = arith.maximumf %101, %102 : vector<4x256xf32>
    %c0_75 = arith.constant 0 : index
    %c0_76 = arith.constant 0 : index
    %c0_77 = arith.constant 0 : index
    %104 = vector.load %arg8[%c0_75, %c0_76, %c0_77] : memref<1x4x256xf32, #tpu.memory_space<vmem>>, vector<1x4x256xf32>
    %105 = vector.shape_cast %104 : vector<1x4x256xf32> to vector<4x256xf32>
    %106 = vector.shape_cast %103 : vector<4x256xf32> to vector<1x4x256xf32>
    tpu.vector_store %arg8[%c0_75, %c0_76, %c0_77], %106 {strides = array<i32>} : memref<1x4x256xf32, #tpu.memory_space<vmem>>, vector<1x4x256xf32>,
    return
  }
  func.func @transform_0(%arg0: i32) -> (i32, i32, i32) {
    %c0_i32 = arith.constant 0 : i32
    %c0_i32_0 = arith.constant 0 : i32
    %c0_i32_1 = arith.constant 0 : i32
    return %arg0, %c0_i32, %c0_i32_0 : i32, i32, i32
  }
  func.func @transform_1(%arg0: i32) -> (i32, i32, i32) {
    %c0_i32 = arith.constant 0 : i32
    %c0_i32_0 = arith.constant 0 : i32
    %c0_i32_1 = arith.constant 0 : i32
    return %arg0, %c0_i32, %c0_i32_0 : i32, i32, i32
  }
  func.func @transform_2(%arg0: i32) -> (i32, i32, i32, i32) {
    %c0_i32 = arith.constant 0 : i32
    %c0_i32_0 = arith.constant 0 : i32
    %c0_i32_1 = arith.constant 0 : i32
    %c0_i32_2 = arith.constant 0 : i32
    return %arg0, %c0_i32, %c0_i32_0, %c0_i32_1 : i32, i32, i32, i32
  }
  func.func @transform_3(%arg0: i32) -> (i32, i32, i32) {
    %c0_i32 = arith.constant 0 : i32
    %c0_i32_0 = arith.constant 0 : i32
    %c0_i32_1 = arith.constant 0 : i32
    %c0_i32_2 = arith.constant 0 : i32
    return %c0_i32, %c0_i32_0, %c0_i32_1 : i32, i32, i32
  }
  func.func @transform_4(%arg0: i32) -> (i32, i32, i32) {
    %c0_i32 = arith.constant 0 : i32
    %c0_i32_0 = arith.constant 0 : i32
    %c0_i32_1 = arith.constant 0 : i32
    return %arg0, %c0_i32, %c0_i32_0 : i32, i32, i32
  }
  func.func @transform_5(%arg0: i32) -> (i32, i32, i32) {
    %c0_i32 = arith.constant 0 : i32
    %c0_i32_0 = arith.constant 0 : i32
    %c0_i32_1 = arith.constant 0 : i32
    return %arg0, %c0_i32, %c0_i32_0 : i32, i32, i32
  }
  func.func @transform_6(%arg0: i32) -> (i32, i32, i32) {
    %c0_i32 = arith.constant 0 : i32
    %c0_i32_0 = arith.constant 0 : i32
    %c0_i32_1 = arith.constant 0 : i32
    return %arg0, %c0_i32, %c0_i32_0 : i32, i32, i32
  }
  func.func @transform_7(%arg0: i32) -> (i32, i32, i32) {
    %c0_i32 = arith.constant 0 : i32
    %c0_i32_0 = arith.constant 0 : i32
    %c0_i32_1 = arith.constant 0 : i32
    return %arg0, %c0_i32, %c0_i32_0 : i32, i32, i32
  }
}

</mosaic_0001>

<bundles_post_ra>
// kernel: basic_block_forward.3
= control target key start
LH: loop header
LB: loop body
LE: loop exit
PB: predicated region body
PF: predicated region fallthrough
CT: control target
= control target key end

     0   :  { %s1375_s24 = smov 0   ;;  %s1533_s0 = inlined_call_operand.vmem [shape: bf16[2,4,256], index: 0, kind: input, shape index: {}]   ;;  %s1534_s1 = inlined_call_operand.vmem [shape: f32[2,4,1], index: 1, kind: input, shape index: {}]   ;;  %s1535_s2 = inlined_call_operand.vmem [shape: bf16[2,9,4,4], index: 2, kind: input, shape index: {}]   ;;  %s1536_s3 = inlined_call_operand.vmem [shape: f32[9,1,256], index: 3, kind: input, shape index: {}]   ;;  %s1537_s4 = inlined_call_operand.vmem [shape: f32[2,4,1], index: 4, kind: input, shape index: {}]   ;;  %s1538_s5 = inlined_call_operand.vmem [shape: f32[2,4,1], index: 5, kind: input, shape index: {}]   ;;  %s1539_s6 = inlined_call_operand.vmem [shape: f32[2,4,256], index: 6, kind: input, shape index: {}]   ;;  %s1540_s7 = inlined_call_operand.vmem [shape: f32[2,4,256], index: 7, kind: output, shape index: {}]  }
   0x1 LB: > { %s1212_s25 = sadd.s32 4294967295, %s1323_s24   ;;  %p1216_p0 = scmp.ge.s32.totalorder %s1323_s24, 1  ;;  %s1323_s24 = sphi %s1375_s24, %s17_s24  }
   0x2   : > { %p284_p1 = scmp.lt.s32.totalorder %s1323_s24, 3 }
   0x4   : > { %p285_p2 = pnand %p1216_p0, %p284_p1 }
   0x5   : > { %p338_p3 = scmp.lt.s32.totalorder (!%p285_p2), %s1212_s25, 1  ;;  %v1325_v0 = vmov (!%p285_p2), 0   ;;  %v1326_v2 = vmov (!%p285_p2), 839922192   ;;  %v381_v4 = vlaneseq (!%p285_p2)  ;;  %s1327_s11 = smov (!%p285_p2), 16   ;;  %vm446_vm0 = vcmask (!%p285_p2), 1041408  }
   0x6   : > { %288 = sbr.rel (%p285_p2) target bundleno = 541 (0x21d), region = 48  ;;  %1314 = vset.pattern.permute.xlu0 (!%p285_p2), %v1325_v0  ;;  %745 = vmatprep.mubr.bf16.mxu0 (!%p285_p2), %v1325_v0  ;;  %v379_v3 = vunpack.c.l.s4 (!%p285_p2), %v1326_v2  ;;  %s1328_s15 = smov (!%p285_p2), 127   ;;  %vm442_vm1 = vcmask (!%p285_p2), 31744   ;;  %v1227_v23 = vld [vmem:[%s1536_s3 + $0x2] sm:$0x3] (!%p285_p2) }
   0x7   : > { %485 = vmatprep.mubr.bf16.mxu1 (!%p285_p2), %v1325_v0  ;;  %1315 = vset.pattern.permute.xlu1 (!%p285_p2), %v1325_v0  ;;  %v382_v6 = vshrl.u32 (!%p285_p2), %v381_v4, 7  ;;  %s1329_s16 = smov (!%p285_p2), 17   ;;  %s1330_s17 = smov (!%p285_p2), 113   ;;  %v1419_v20 = vand.u32 (!%p285_p2), 127, %v381_v4  ;;  %v1244_v27 = vld [vmem:[%s1536_s3 + $0xa] sm:$0x3] (!%p285_p2) }
   0x8   : > { %v380_v5 = vunpack.c.0.s8 (!%p285_p2), %v379_v3  ;;  %s1331_s18 = smov (!%p285_p2), 15   ;;  %s1332_s19 = smov (!%p285_p2), 112   ;;  %v399_v36 = vld [vmem:[%s1536_s3] sm:$0x3] (!%p285_p2)  ;;  %v1248_v48 = vld [vmem:[%s1536_s3 + $0xc] sm:$0x3] (!%p285_p2) }
   0x9   : > { %s1333_s20 = smov (!%p285_p2), 1   ;;  %s1334_s27 = smov (!%p285_p2), 111   ;;  %v1421_v21 = vsub.s32 (!%p285_p2), 0, %v382_v6  ;;  %v1423_v22 = vsub.s32 (!%p285_p2), 1, %v382_v6  ;;  %vm420_vm2 = vcmp.lt.s32.totalorder (!%p285_p2), %v1419_v20, 16  ;;  %vm760_vm3 = vcmp.lt.s32.totalorder (!%p285_p2), %v1419_v20, 127 }
   0xa   : > { %v383_v8 = vsub.s32 (!%p285_p2), %v380_v5, %v382_v6  ;;  %vm396_vm4 = vcmp.lt.s32.totalorder (!%p285_p2), %v1419_v20, 17  ;;  %vm838_vm5 = vcmp.lt.s32.totalorder (!%p285_p2), %v1419_v20, 113  ;;  %v1233_v61 = vld [vmem:[%s1536_s3 + $0x4] sm:$0x3] (!%p285_p2)  ;;  %vm548_vm6 = vcmp.lt.s32.totalorder (!%p285_p2), %v1419_v20, 15 }
   0xb   : > { %v429_v25 = vrot.slane (!%p285_p2), %v1227_v23, %v1421_v21  ;;  %v433_v26 = vrot.slane (!%p285_p2), %v1227_v23, %v1423_v22  ;;  %v769_v33 = vrot.slane (!%p285_p2), %v1244_v27, %v1421_v21  ;;  %v773_v34 = vrot.slane (!%p285_p2), %v1244_v27, %v1423_v22 }
   0xc   : > { %v404_v42 = vrot.slane (!%p285_p2), %v399_v36, %v1421_v21  ;;  %v408_v47 = vrot.slane (!%p285_p2), %v399_v36, %v1423_v22  ;;  %v847_v55 = vrot.slane (!%p285_p2), %v1248_v48, %v1421_v21  ;;  %v851_v60 = vrot.slane (!%p285_p2), %v1248_v48, %v1423_v22 }
   0xd   : > { %s1542_s25 = smov (!%p338_p3, %s1212_s25), 1  ;;  %v557_v5 = vrot.slane %v1233_v61, %v1421_v21  ;;  %vm916_vm7 = vcmp.lt.s32.totalorder %v1419_v20, 112  ;;  %vm626_vm8 = vcmp.lt.s32.totalorder %v1419_v20, 1  ;;  %vm994_vm9 = vcmp.lt.s32.totalorder %v1419_v20, 111 }
   0xe   : > { %s1390_s26 = sshll.u32 %s1542_s25, 2  ;;  %s1295_s10 = smul.u32 18, %s1542_s25 }
   0xf   : > { %s346_s29 = scalar_lea.vmem %s1534_s1, %s1390_s26  ;;  %s342_s9 = scalar_lea.vmem %s1533_s0, %s1390_s26 }
  0x10   : > { %v373_v1 = vld [vmem:[%s346_s29] sm:$0xf]  ;;  %s1404_s14 = scalar_lea.vmem %s1535_s2, %s1295_s10  ;;  %s359_s23 = scalar_lea.vmem %s1538_s5, %s1390_s26 }
  0x11   : > { %376 = vperm.xlu0 %1314, %v373_v1   ;;  %v371_v7 = vld [vmem:[%s342_s9] sm:$0xf]  ;;  %v1241_v17 = vld [vmem:[%s1404_s14 + $0x8] sm:$0x3]  ;;  %s355_s30 = scalar_lea.vmem %s1537_s4, %s1390_s26  ;;  %v1245_v62 = vld [vmem:[%s1404_s14 + $0xa] sm:$0x3] }
  0x12   : > { %v372_v9 = vunpack.c.l.bf16 %v371_v7  ;;  %v1076_v18 = vld [vmem:[%s359_s23] sm:$0xf] }
  0x13   : > { %v1068_v19 = vld [vmem:[%s355_s30] sm:$0xf] }
  0x14   : > { %v1228_v49 = vld [vmem:[%s1404_s14 + $0x2] sm:$0x3]  ;;  %v413_v27 = vld [vmem:[%s1404_s14] sm:$0x3] }
  0x90   : > { %v377_v10 = vpop.permute.xlu0 %376 }
  0x91   : > { %v384_v11 = vrot.slane %v377_v10, %v383_v8  ;;  %v561_v10 = vrot.slane %v1233_v61, %v1423_v22 }
  0x93   : > { %v386_v12 = vmul.f32 %v384_v11, %v372_v9  ;;  %v1252_v11 = vld [vmem:[%s1536_s3 + $0xe] sm:$0x3] }
  0x95   : > { %416 = vrot.lane.b32.xlu0 %v386_v12, %s1327_s11  ;;  %v388_v13 = vcombine.high %v386_v12, %v386_v12  ;;  %v702_v14 = vpack.c.bf16 %v386_v12, %v386_v12 }
  0x97   : > { %418 = vrot.lane.b32.xlu1 %v388_v13, %s1327_s11  ;;  %v703_v15 = vpack.c.bf16 %v388_v13, %v388_v13  ;;  %v708_v16 = vsel %vm446_vm0, %v702_v14, 0 }
  0x99   : > { %758 = vrot.lane.b32.xlu0 %v388_v13, %s1328_s15  ;;  %1242 = vmatprep.subr.msk.bf16.mxu0 %vm446_vm0, %v703_v15 }
  0x9a   : > { %714 = vmatpush1.bf16.msra.mxu0 %v708_v16 }
  0x9b   : > { %756 = vrot.lane.b32.xlu1 %v386_v12, %s1328_s15 }
  0x9d   : > { %392 = vrot.lane.b32.xlu0 %v388_v13, %s1329_s16  ;;  %1243 = vmatmul.mubr.msk.bf16.vlgmr.msra.gmra.mrb[0].mxu0 %vm442_vm1, %v1241_v17  ;;  %v925_v17 = vrot.slane %v1252_v11, %v1421_v21 }
  0x9e   : > { %823 = vmatprep.mubr.bf16.mxu0 %v1325_v0 }
  0x9f   : > { %390 = vrot.lane.b32.xlu1 %v386_v12, %s1329_s16 }
  0xa1   : > { %836 = vrot.lane.b32.xlu0 %v388_v13, %s1330_s17 }
  0xa3   : > { %834 = vrot.lane.b32.xlu1 %v386_v12, %s1330_s17 }
  0xa5   : > { %546 = vrot.lane.b32.xlu0 %v388_v13, %s1331_s18 }
  0xa7   : > { %544 = vrot.lane.b32.xlu1 %v386_v12, %s1331_s18 }
  0xa9   : > { %914 = vrot.lane.b32.xlu0 %v388_v13, %s1332_s19 }
  0xab   : > { %912 = vrot.lane.b32.xlu1 %v386_v12, %s1332_s19 }
  0xad   : > { %624 = vrot.lane.b32.xlu0 %v388_v13, %s1333_s20 }
  0xaf   : > { %622 = vrot.lane.b32.xlu1 %v386_v12, %s1333_s20 }
  0xb1   : > { %992 = vrot.lane.b32.xlu0 %v388_v13, %s1334_s27 }
  0xb3   : > { %990 = vrot.lane.b32.xlu1 %v386_v12, %s1334_s27  ;;  %s1263_s27 = sshll.u32 %s1542_s25, 3 }
  0xb4   : > { %s364_s30 = scalar_lea.vmem %s1539_s6, %s1263_s27  ;;  %s369_s8 = scalar_lea.vmem %s1540_s7, %s1263_s27 }
  0xb5   : > { %1079 = vperm.xlu0 %1314, %v1076_v18  }
  0xb7   : > { %1071 = vperm.xlu1 %1315, %v1068_v19  }
 0x107   : > { %v417_v24 = vpop.permute.xlu0 %416 }
 0x109   : > { %v419_v28 = vpop.permute.xlu1 %418 }
 0x10a   : > { %v421_v29 = vsel %vm420_vm2, %v417_v24, %v419_v28  ;;  %v422_v30 = vsel %vm420_vm2, %v419_v28, %v417_v24 }
 0x10b   : > { %v436_v31 = vmul.f32 %v429_v25, %v422_v30  ;;  %v759_v32 = vpop.permute.xlu0 %758  ;;  %v437_v35 = vmul.f32 %v433_v26, %v421_v29  ;;  %v929_v25 = vrot.slane %v1252_v11, %v1423_v22  ;;  %v1237_v26 = vld [vmem:[%s1536_s3 + $0x6] sm:$0x3] }
 0x10d   : > { %v757_v37 = vpop.permute.xlu1 %756  ;;  %v441_v38 = vpack.c.bf16 %v437_v35, %v437_v35  ;;  %v440_v39 = vpack.c.bf16 %v436_v31, %v436_v31 }
 0x10e   : > { %v761_v40 = vsel %vm760_vm3, %v757_v37, %v759_v32  ;;  %v762_v41 = vsel %vm760_vm3, %v759_v32, %v757_v37 }
 0x10f   : > { %v776_v43 = vmul.f32 %v769_v33, %v761_v40  ;;  %v777_v44 = vmul.f32 %v773_v34, %v762_v41  ;;  %v393_v45 = vpop.permute.xlu0 %392  ;;  %1229 = vmatprep.subr.msk.bf16.mxu1 %vm446_vm0, %v441_v38  ;;  %v448_v46 = vsel %vm446_vm0, %v440_v39, 0  ;;  %v635_v33 = vrot.slane %v1237_v26, %v1421_v21  ;;  %v1256_v39 = vld [vmem:[%s1536_s3 + $0x10] sm:$0x3]  ;;  %v1249_v40 = vld [vmem:[%s1404_s14 + $0xc] sm:$0x3] }
 0x110   : > { %454 = vmatpush1.bf16.msra.mxu1 %v448_v46  ;;  %v639_v38 = vrot.slane %v1237_v26, %v1423_v22  ;;  %v1003_v46 = vrot.slane %v1256_v39, %v1421_v21 }
 0x111   : > { %v780_v50 = vpack.c.bf16 %v776_v43, %v776_v43  ;;  %v781_v51 = vpack.c.bf16 %v777_v44, %v777_v44  ;;  %v391_v52 = vpop.permute.xlu1 %390 }
 0x112   : > { %v397_v53 = vsel %vm396_vm4, %v391_v52, %v393_v45  ;;  %v398_v54 = vsel %vm396_vm4, %v393_v45, %v391_v52 }
 0x113   : > { %v411_v56 = vmul.f32 %v404_v42, %v398_v54  ;;  %v412_v57 = vmul.f32 %v408_v47, %v397_v53  ;;  %v837_v58 = vpop.permute.xlu0 %836  ;;  %1230 = vmatmul.mubr.msk.bf16.vlgmr.msra.gmra.mrb[0].mxu1 %vm442_vm1, %v1228_v49  ;;  %1246 = vmatprep.subr.msk.bf16.mxu0 %vm446_vm0, %v781_v51  ;;  %v786_v59 = vsel %vm446_vm0, %v780_v50, 0  ;;  %v1007_v50 = vrot.slane %v1256_v39, %v1423_v22 }
 0x114   : > { %792 = vmatpush1.bf16.msra.mxu0 %v786_v59  ;;  %535 = vmatprep.mubr.bf16.mxu1 %v1325_v0 }
 0x115   : > { %v414_v63 = vpack.c.bf16 %v411_v56, %v411_v56  ;;  %v415_v1 = vpack.c.bf16 %v412_v57, %v412_v57  ;;  %v835_v2 = vpop.permute.xlu1 %834  ;;  %v1234_v57 = vld [vmem:[%s1404_s14 + $0x4] sm:$0x3] }
 0x116   : > { %v839_v3 = vsel %vm838_vm5, %v835_v2, %v837_v58  ;;  %v840_v4 = vsel %vm838_vm5, %v837_v58, %v835_v2 }
 0x117   : > { %v854_v6 = vmul.f32 %v847_v55, %v839_v3  ;;  %v855_v7 = vmul.f32 %v851_v60, %v840_v4  ;;  %v547_v8 = vpop.permute.xlu0 %546  ;;  %1231 = vmatprep.subr.msk.bf16.mxu1 %vm446_vm0, %v415_v1  ;;  %1247 = vmatmul.mubr.msk.bf16.vlgmr.msra.gmra.mrb[0].mxu0 %vm442_vm1, %v1245_v62  ;;  %v498_v9 = vsel %vm446_vm0, %v414_v63, 0  ;;  %v1253_v60 = vld [vmem:[%s1404_s14 + $0xe] sm:$0x3]  ;;  %v1238_v62 = vld [vmem:[%s1404_s14 + $0x6] sm:$0x3] }
 0x118   : > { %504 = vmatpush1.bf16.msra.mxu1 %v498_v9  ;;  %901 = vmatprep.mubr.bf16.mxu0 %v1325_v0  ;;  %v1257_v63 = vld [vmem:[%s1404_s14 + $0x10] sm:$0x3] }
 0x119   : > { %v858_v12 = vpack.c.bf16 %v854_v6, %v854_v6  ;;  %v859_v13 = vpack.c.bf16 %v855_v7, %v855_v7  ;;  %v545_v14 = vpop.permute.xlu1 %544 }
 0x11a   : > { %v549_v15 = vsel %vm548_vm6, %v545_v14, %v547_v8  ;;  %v550_v16 = vsel %vm548_vm6, %v547_v8, %v545_v14 }
 0x11b   : > { %v564_v18 = vmul.f32 %v557_v5, %v550_v16  ;;  %v565_v19 = vmul.f32 %v561_v10, %v549_v15  ;;  %v915_v23 = vpop.permute.xlu0 %914  ;;  %1250 = vmatprep.subr.msk.bf16.mxu0 %vm446_vm0, %v859_v13  ;;  %v864_v24 = vsel %vm446_vm0, %v858_v12, 0 }
 0x11c   : > { %870 = vmatpush1.bf16.msra.mxu0 %v864_v24 }
 0x11d   : > { %v568_v28 = vpack.c.bf16 %v564_v18, %v564_v18  ;;  %v569_v29 = vpack.c.bf16 %v565_v19, %v565_v19  ;;  %v913_v30 = vpop.permute.xlu1 %912 }
 0x11e   : > { %v917_v31 = vsel %vm916_vm7, %v913_v30, %v915_v23  ;;  %v918_v32 = vsel %vm916_vm7, %v915_v23, %v913_v30 }
 0x11f   : > { %v932_v34 = vmul.f32 %v925_v17, %v917_v31  ;;  %v933_v35 = vmul.f32 %v929_v25, %v918_v32  ;;  %v625_v36 = vpop.permute.xlu0 %624  ;;  %1232 = vmatmul.mubr.msk.bf16.vlgmr.msra.gmra.mrb[0].mxu1 %vm442_vm1, %v413_v27  ;;  %1235 = vmatprep.subr.msk.bf16.mxu1 %vm446_vm0, %v569_v29  ;;  %v574_v37 = vsel %vm446_vm0, %v568_v28, 0 }
 0x120   : > { %580 = vmatpush1.bf16.msra.mxu1 %v574_v37  ;;  %611 = vmatprep.mubr.bf16.mxu1 %v1325_v0 }
 0x121   : > { %v936_v41 = vpack.c.bf16 %v932_v34, %v932_v34  ;;  %v937_v42 = vpack.c.bf16 %v933_v35, %v933_v35  ;;  %v623_v43 = vpop.permute.xlu1 %622 }
 0x122   : > { %v627_v44 = vsel %vm626_vm8, %v623_v43, %v625_v36  ;;  %v628_v45 = vsel %vm626_vm8, %v625_v36, %v623_v43 }
 0x123   : > { %v642_v47 = vmul.f32 %v635_v33, %v628_v45  ;;  %v643_v48 = vmul.f32 %v639_v38, %v627_v44  ;;  %1251 = vmatmul.mubr.msk.bf16.vlgmr.msra.gmra.mrb[0].mxu0 %vm442_vm1, %v1249_v40  ;;  %1254 = vmatprep.subr.msk.bf16.mxu0 %vm446_vm0, %v937_v42  ;;  %v942_v49 = vsel %vm446_vm0, %v936_v41, 0  ;;  %v993_v52 = vpop.permute.xlu0 %992 }
 0x124   : > { %948 = vmatpush1.bf16.msra.mxu0 %v942_v49  ;;  %979 = vmatprep.mubr.bf16.mxu0 %v1325_v0 }
 0x125   : > { %v647_v51 = vpack.c.bf16 %v643_v48, %v643_v48  ;;  %v991_v20 = vpop.permute.xlu1 %990  ;;  %v646_v54 = vpack.c.bf16 %v642_v47, %v642_v47 }
 0x126   : > { %v995_v53 = vsel %vm994_vm9, %v991_v20, %v993_v52  ;;  %v996_v21 = vsel %vm994_vm9, %v993_v52, %v991_v20 }
 0x127   : > { %v1010_v55 = vmul.f32 %v1003_v46, %v995_v53  ;;  %v1011_v56 = vmul.f32 %v1007_v50, %v996_v21  ;;  %1239 = vmatprep.subr.msk.bf16.mxu1 %vm446_vm0, %v647_v51  ;;  %v652_v59 = vsel %vm446_vm0, %v646_v54, 0 }
 0x129   : > { %v1015_v58 = vpack.c.bf16 %v1011_v56, %v1011_v56  ;;  %v1014_v22 = vpack.c.bf16 %v1010_v55, %v1010_v55 }
 0x12b   : > { %1236 = vmatmul.mubr.msk.bf16.vlgmr.msra.gmra.mrb[0].mxu1 %vm442_vm1, %v1234_v57  ;;  %1258 = vmatprep.subr.msk.bf16.mxu0 %vm446_vm0, %v1015_v58  ;;  %v1020_v61 = vsel %vm446_vm0, %v1014_v22, 0 }
 0x12c   : > { %658 = vmatpush1.bf16.msra.mxu1 %v652_v59  ;;  %689 = vmatprep.mubr.bf16.mxu1 %v1325_v0 }
 0x12f   : > { %1255 = vmatmul.mubr.msk.bf16.vlgmr.msra.gmra.mrb[0].mxu0 %vm442_vm1, %v1253_v60 }
 0x130   : > { %1026 = vmatpush1.bf16.msra.mxu0 %v1020_v61  ;;  %1057 = vmatprep.mubr.bf16.mxu0 %v1325_v0  ;;  %v1084_v0 = vld [vmem:[%s364_s30] sm:$0xff] }
 0x131   : > { %v1086_v14 = vcombine.high %v1084_v0, %v1084_v0 }
 0x134   : > { %v1080_v13 = vpop.permute.xlu0 %1079 }
 0x136   : > { %v1072_v6 = vpop.permute.xlu1 %1071 }
 0x137   : > { %1240 = vmatmul.mubr.msk.bf16.vlgmr.msra.gmra.mrb[0].mxu1 %vm442_vm1, %v1238_v62 }
 0x13b   : > { %1259 = vmatmul.mubr.msk.bf16.vlgmr.msra.gmra.mrb[0].mxu0 %vm442_vm1, %v1257_v63 }
 0x20a   : > { %v691_v1 = vpop.f32.mrb[0].mxu1 }
 0x20b   : > { %v693_v2 = vpop.f32.mrb[1].mxu1 }
 0x20c   : > { %v695_v3 = vpop.f32.mrb[2].mxu1 }
 0x20d   : > { %v696_v4 = vpop.f32.mrb[3].mxu1 }
 0x20e   : > { %v1059_v5 = vpop.f32.mrb[0].mxu0 }
 0x20f   : > { %v1265_v7 = vadd.f32 %v1059_v5, %v691_v1  ;;  %v1061_v8 = vpop.f32.mrb[1].mxu0 }
 0x210   : > { %v1266_v9 = vadd.f32 %v1061_v8, %v693_v2  ;;  %v1063_v10 = vpop.f32.mrb[2].mxu0 }
 0x211   : > { %v1074_v11 = vmul.f32 %v1265_v7, %v1072_v6  ;;  %v1064_v12 = vpop.f32.mrb[3].mxu0 }
 0x212   : > { %v1075_v15 = vmul.f32 %v1266_v9, %v1072_v6 }
 0x213   : > { %v1082_v16 = vadd.f32 %v1080_v13, %v1074_v11 }
 0x214   : > { %v1083_v17 = vadd.f32 %v1080_v13, %v1075_v15 }
 0x215   : > { %v1088_v18 = vadd.f32 %v1084_v0, %v1082_v16 }
 0x216   : > { %v1089_v19 = vadd.f32 %v1086_v14, %v1083_v17 }
 0x217   : > { %v1090_v23 = vmax.f32 %v1088_v18, 0.0 }
 0x218   : > { %v1091_v24 = vmax.f32 %v1089_v19, 0.0 }
 0x21a   : > { %v1094_v25 = vcombine.low %v1090_v23, %v1091_v24 }
 0x21c   : > { %1096 = vst [vmem:[%s369_s8] sm:$0xff] %v1094_v25 }
 0x21d PF: > { %s17_s24 = sadd.s32 1, %s1323_s24  }
 0x21e   : > { %p14_p4 = scmp.ge.s32.totalorder %s17_s24, 4  }
 0x220   :  { %16 = sbr.rel (!%p14_p4) target bundleno = 1 (0x1), region = 108 }

// kernel: basic_block_forward.2
= control target key start
LH: loop header
LB: loop body
LE: loop exit
PB: predicated region body
PF: predicated region fallthrough
CT: control target
= control target key end

     0   :  { %s1397_s24 = smov 0   ;;  %s1552_s0 = inlined_call_operand.vmem [shape: bf16[2,4,256], index: 0, kind: input, shape index: {}]   ;;  %s1553_s1 = inlined_call_operand.vmem [shape: f32[2,4,1], index: 1, kind: input, shape index: {}]   ;;  %s1554_s2 = inlined_call_operand.vmem [shape: bf16[2,9,4,4], index: 2, kind: input, shape index: {}]   ;;  %s1555_s3 = inlined_call_operand.vmem [shape: f32[9,1,256], index: 3, kind: input, shape index: {}]   ;;  %s1556_s4 = inlined_call_operand.vmem [shape: f32[2,4,1], index: 4, kind: input, shape index: {}]   ;;  %s1557_s5 = inlined_call_operand.vmem [shape: f32[2,4,1], index: 5, kind: input, shape index: {}]   ;;  %s1558_s6 = inlined_call_operand.vmem [shape: bf16[2,4,256], index: 6, kind: output, shape index: {0}]   ;;  %s1559_s7 = inlined_call_operand.vmem [shape: f32[2,4,1], index: 7, kind: output, shape index: {1}]  }
   0x1 LB: > { %s1235_s25 = sadd.s32 4294967295, %s1345_s24   ;;  %p1239_p0 = scmp.ge.s32.totalorder %s1345_s24, 1  ;;  %s1345_s24 = sphi %s1397_s24, %s18_s24  }
   0x2   : > { %p277_p1 = scmp.lt.s32.totalorder %s1345_s24, 3 }
   0x4   : > { %p278_p2 = pnand %p1239_p0, %p277_p1 }
   0x5   : > { %p330_p3 = scmp.lt.s32.totalorder (!%p278_p2), %s1235_s25, 1  ;;  %v1347_v0 = vmov (!%p278_p2), 0   ;;  %v1348_v2 = vmov (!%p278_p2), 839922192   ;;  %v372_v4 = vlaneseq (!%p278_p2)  ;;  %s1349_s11 = smov (!%p278_p2), 16   ;;  %vm437_vm0 = vcmask (!%p278_p2), 1041408  }
   0x6   : > { %281 = sbr.rel (%p278_p2) target bundleno = 684 (0x2ac), region = 44  ;;  %1337 = vset.pattern.permute.xlu0 (!%p278_p2), %v1347_v0  ;;  %736 = vmatprep.mubr.bf16.mxu0 (!%p278_p2), %v1347_v0  ;;  %v370_v3 = vunpack.c.l.s4 (!%p278_p2), %v1348_v2  ;;  %s1350_s15 = smov (!%p278_p2), 127   ;;  %vm433_vm1 = vcmask (!%p278_p2), 31744   ;;  %v1249_v23 = vld [vmem:[%s1555_s3 + $0x2] sm:$0x3] (!%p278_p2)  ;;  %vm1091_vm10 = vcmask (!%p278_p2), 1043456  }
   0x7   : > { %476 = vmatprep.mubr.bf16.mxu1 (!%p278_p2), %v1347_v0  ;;  %1338 = vset.pattern.permute.xlu1 (!%p278_p2), %v1347_v0  ;;  %v373_v6 = vshrl.u32 (!%p278_p2), %v372_v4, 7  ;;  %s1351_s16 = smov (!%p278_p2), 17   ;;  %s1352_s17 = smov (!%p278_p2), 113   ;;  %v1437_v20 = vand.u32 (!%p278_p2), 127, %v372_v4  ;;  %v1266_v27 = vld [vmem:[%s1555_s3 + $0xa] sm:$0x3] (!%p278_p2) }
   0x8   : > { %v371_v5 = vunpack.c.0.s8 (!%p278_p2), %v370_v3  ;;  %s1353_s18 = smov (!%p278_p2), 15   ;;  %s1354_s19 = smov (!%p278_p2), 112   ;;  %v390_v36 = vld [vmem:[%s1555_s3] sm:$0x3] (!%p278_p2)  ;;  %v1270_v48 = vld [vmem:[%s1555_s3 + $0xc] sm:$0x3] (!%p278_p2) }
   0x9   : > { %s1355_s20 = smov (!%p278_p2), 1   ;;  %v1439_v21 = vsub.s32 (!%p278_p2), 0, %v373_v6  ;;  %v1441_v22 = vsub.s32 (!%p278_p2), 1, %v373_v6  ;;  %vm411_vm2 = vcmp.lt.s32.totalorder (!%p278_p2), %v1437_v20, 16  ;;  %vm751_vm3 = vcmp.lt.s32.totalorder (!%p278_p2), %v1437_v20, 127 }
   0xa   : > { %v374_v8 = vsub.s32 (!%p278_p2), %v371_v5, %v373_v6  ;;  %vm387_vm4 = vcmp.lt.s32.totalorder (!%p278_p2), %v1437_v20, 17  ;;  %vm829_vm5 = vcmp.lt.s32.totalorder (!%p278_p2), %v1437_v20, 113  ;;  %v1255_v61 = vld [vmem:[%s1555_s3 + $0x4] sm:$0x3] (!%p278_p2)  ;;  %vm539_vm6 = vcmp.lt.s32.totalorder (!%p278_p2), %v1437_v20, 15 }
   0xb   : > { %v420_v25 = vrot.slane (!%p278_p2), %v1249_v23, %v1439_v21  ;;  %v424_v26 = vrot.slane (!%p278_p2), %v1249_v23, %v1441_v22  ;;  %v760_v33 = vrot.slane (!%p278_p2), %v1266_v27, %v1439_v21  ;;  %v764_v34 = vrot.slane (!%p278_p2), %v1266_v27, %v1441_v22 }
   0xc   : > { %v395_v42 = vrot.slane (!%p278_p2), %v390_v36, %v1439_v21  ;;  %v399_v47 = vrot.slane (!%p278_p2), %v390_v36, %v1441_v22  ;;  %v838_v55 = vrot.slane (!%p278_p2), %v1270_v48, %v1439_v21  ;;  %v842_v60 = vrot.slane (!%p278_p2), %v1270_v48, %v1441_v22 }
   0xd   : > { %s1561_s25 = smov (!%p330_p3, %s1235_s25), 1  ;;  %v548_v5 = vrot.slane %v1255_v61, %v1439_v21  ;;  %vm907_vm7 = vcmp.lt.s32.totalorder %v1437_v20, 112  ;;  %vm617_vm8 = vcmp.lt.s32.totalorder %v1437_v20, 1  ;;  %vm985_vm9 = vcmp.lt.s32.totalorder %v1437_v20, 111 }
   0xe   : > { %s1409_s26 = sshll.u32 %s1561_s25, 2  ;;  %s1318_s10 = smul.u32 18, %s1561_s25  ;;  %vm1099_vm11 = vcmask 3072  }
   0xf   : > { %s338_s29 = scalar_lea.vmem %s1553_s1, %s1409_s26  ;;  %s334_s9 = scalar_lea.vmem %s1552_s0, %s1409_s26 }
  0x10   : > { %v364_v1 = vld [vmem:[%s338_s29] sm:$0xf]  ;;  %s1422_s14 = scalar_lea.vmem %s1554_s2, %s1318_s10  ;;  %s351_s23 = scalar_lea.vmem %s1557_s5, %s1409_s26 }
  0x11   : > { %367 = vperm.xlu0 %1337, %v364_v1   ;;  %v362_v7 = vld [vmem:[%s334_s9] sm:$0xf]  ;;  %v1263_v17 = vld [vmem:[%s1422_s14 + $0x8] sm:$0x3]  ;;  %s1356_s25 = smov 111   ;;  %s347_s29 = scalar_lea.vmem %s1556_s4, %s1409_s26 }
  0x12   : > { %v363_v9 = vunpack.c.l.bf16 %v362_v7  ;;  %v1067_v18 = vld [vmem:[%s351_s23] sm:$0xf]  ;;  %v1267_v62 = vld [vmem:[%s1422_s14 + $0xa] sm:$0x3]  ;;  %s356_s27 = scalar_lea.vmem %s1558_s6, %s1409_s26  ;;  %s360_s30 = scalar_lea.vmem %s1559_s7, %s1409_s26 }
  0x13   : > { %v1059_v19 = vld [vmem:[%s347_s29] sm:$0xf] }
  0x14   : > { %v1250_v49 = vld [vmem:[%s1422_s14 + $0x2] sm:$0x3]  ;;  %v404_v27 = vld [vmem:[%s1422_s14] sm:$0x3] }
  0x90   : > { %v368_v10 = vpop.permute.xlu0 %367 }
  0x91   : > { %v375_v11 = vrot.slane %v368_v10, %v374_v8  ;;  %v552_v10 = vrot.slane %v1255_v61, %v1441_v22 }
  0x93   : > { %v377_v12 = vmul.f32 %v375_v11, %v363_v9  ;;  %v1274_v11 = vld [vmem:[%s1555_s3 + $0xe] sm:$0x3] }
  0x95   : > { %407 = vrot.lane.b32.xlu0 %v377_v12, %s1349_s11  ;;  %v379_v13 = vcombine.high %v377_v12, %v377_v12  ;;  %v693_v14 = vpack.c.bf16 %v377_v12, %v377_v12 }
  0x97   : > { %409 = vrot.lane.b32.xlu1 %v379_v13, %s1349_s11  ;;  %v694_v15 = vpack.c.bf16 %v379_v13, %v379_v13  ;;  %v699_v16 = vsel %vm437_vm0, %v693_v14, 0 }
  0x99   : > { %749 = vrot.lane.b32.xlu0 %v379_v13, %s1350_s15  ;;  %1264 = vmatprep.subr.msk.bf16.mxu0 %vm437_vm0, %v694_v15 }
  0x9a   : > { %705 = vmatpush1.bf16.msra.mxu0 %v699_v16 }
  0x9b   : > { %747 = vrot.lane.b32.xlu1 %v377_v12, %s1350_s15 }
  0x9d   : > { %383 = vrot.lane.b32.xlu0 %v379_v13, %s1351_s16  ;;  %1265 = vmatmul.mubr.msk.bf16.vlgmr.msra.gmra.mrb[0].mxu0 %vm433_vm1, %v1263_v17  ;;  %v916_v17 = vrot.slane %v1274_v11, %v1439_v21 }
  0x9e   : > { %814 = vmatprep.mubr.bf16.mxu0 %v1347_v0 }
  0x9f   : > { %381 = vrot.lane.b32.xlu1 %v377_v12, %s1351_s16 }
  0xa1   : > { %827 = vrot.lane.b32.xlu0 %v379_v13, %s1352_s17 }
  0xa3   : > { %825 = vrot.lane.b32.xlu1 %v377_v12, %s1352_s17 }
  0xa5   : > { %537 = vrot.lane.b32.xlu0 %v379_v13, %s1353_s18 }
  0xa7   : > { %535 = vrot.lane.b32.xlu1 %v377_v12, %s1353_s18 }
  0xa9   : > { %905 = vrot.lane.b32.xlu0 %v379_v13, %s1354_s19 }
  0xab   : > { %903 = vrot.lane.b32.xlu1 %v377_v12, %s1354_s19 }
  0xad   : > { %615 = vrot.lane.b32.xlu0 %v379_v13, %s1355_s20 }
  0xaf   : > { %613 = vrot.lane.b32.xlu1 %v377_v12, %s1355_s20 }
  0xb1   : > { %983 = vrot.lane.b32.xlu0 %v379_v13, %s1356_s25 }
  0xb3   : > { %981 = vrot.lane.b32.xlu1 %v377_v12, %s1356_s25 }
  0xb5   : > { %1070 = vperm.xlu0 %1337, %v1067_v18  }
  0xb7   : > { %1062 = vperm.xlu1 %1338, %v1059_v19  }
 0x107   : > { %v408_v24 = vpop.permute.xlu0 %407 }
 0x109   : > { %v410_v28 = vpop.permute.xlu1 %409 }
 0x10a   : > { %v412_v29 = vsel %vm411_vm2, %v408_v24, %v410_v28  ;;  %v413_v30 = vsel %vm411_vm2, %v410_v28, %v408_v24 }
 0x10b   : > { %v427_v31 = vmul.f32 %v420_v25, %v413_v30  ;;  %v750_v32 = vpop.permute.xlu0 %749  ;;  %v428_v35 = vmul.f32 %v424_v26, %v412_v29  ;;  %v920_v25 = vrot.slane %v1274_v11, %v1441_v22  ;;  %v1259_v26 = vld [vmem:[%s1555_s3 + $0x6] sm:$0x3] }
 0x10d   : > { %v748_v37 = vpop.permute.xlu1 %747  ;;  %v432_v38 = vpack.c.bf16 %v428_v35, %v428_v35  ;;  %v431_v39 = vpack.c.bf16 %v427_v31, %v427_v31 }
 0x10e   : > { %v752_v40 = vsel %vm751_vm3, %v748_v37, %v750_v32  ;;  %v753_v41 = vsel %vm751_vm3, %v750_v32, %v748_v37 }
 0x10f   : > { %v767_v43 = vmul.f32 %v760_v33, %v752_v40  ;;  %v768_v44 = vmul.f32 %v764_v34, %v753_v41  ;;  %v384_v45 = vpop.permute.xlu0 %383  ;;  %1251 = vmatprep.subr.msk.bf16.mxu1 %vm437_vm0, %v432_v38  ;;  %v439_v46 = vsel %vm437_vm0, %v431_v39, 0  ;;  %v626_v33 = vrot.slane %v1259_v26, %v1439_v21  ;;  %v1278_v39 = vld [vmem:[%s1555_s3 + $0x10] sm:$0x3]  ;;  %v1271_v40 = vld [vmem:[%s1422_s14 + $0xc] sm:$0x3] }
 0x110   : > { %445 = vmatpush1.bf16.msra.mxu1 %v439_v46  ;;  %v630_v38 = vrot.slane %v1259_v26, %v1441_v22  ;;  %v994_v46 = vrot.slane %v1278_v39, %v1439_v21 }
 0x111   : > { %v771_v50 = vpack.c.bf16 %v767_v43, %v767_v43  ;;  %v772_v51 = vpack.c.bf16 %v768_v44, %v768_v44  ;;  %v382_v52 = vpop.permute.xlu1 %381 }
 0x112   : > { %v388_v53 = vsel %vm387_vm4, %v382_v52, %v384_v45  ;;  %v389_v54 = vsel %vm387_vm4, %v384_v45, %v382_v52 }
 0x113   : > { %v402_v56 = vmul.f32 %v395_v42, %v389_v54  ;;  %v403_v57 = vmul.f32 %v399_v47, %v388_v53  ;;  %v828_v58 = vpop.permute.xlu0 %827  ;;  %1252 = vmatmul.mubr.msk.bf16.vlgmr.msra.gmra.mrb[0].mxu1 %vm433_vm1, %v1250_v49  ;;  %1268 = vmatprep.subr.msk.bf16.mxu0 %vm437_vm0, %v772_v51  ;;  %v777_v59 = vsel %vm437_vm0, %v771_v50, 0  ;;  %v998_v50 = vrot.slane %v1278_v39, %v1441_v22 }
 0x114   : > { %783 = vmatpush1.bf16.msra.mxu0 %v777_v59  ;;  %526 = vmatprep.mubr.bf16.mxu1 %v1347_v0 }
 0x115   : > { %v405_v63 = vpack.c.bf16 %v402_v56, %v402_v56  ;;  %v406_v1 = vpack.c.bf16 %v403_v57, %v403_v57  ;;  %v826_v2 = vpop.permute.xlu1 %825  ;;  %v1256_v57 = vld [vmem:[%s1422_s14 + $0x4] sm:$0x3] }
 0x116   : > { %v830_v3 = vsel %vm829_vm5, %v826_v2, %v828_v58  ;;  %v831_v4 = vsel %vm829_vm5, %v828_v58, %v826_v2 }
 0x117   : > { %v845_v6 = vmul.f32 %v838_v55, %v830_v3  ;;  %v846_v7 = vmul.f32 %v842_v60, %v831_v4  ;;  %v538_v8 = vpop.permute.xlu0 %537  ;;  %1253 = vmatprep.subr.msk.bf16.mxu1 %vm437_vm0, %v406_v1  ;;  %1269 = vmatmul.mubr.msk.bf16.vlgmr.msra.gmra.mrb[0].mxu0 %vm433_vm1, %v1267_v62  ;;  %v489_v9 = vsel %vm437_vm0, %v405_v63, 0  ;;  %v1275_v60 = vld [vmem:[%s1422_s14 + $0xe] sm:$0x3]  ;;  %v1260_v62 = vld [vmem:[%s1422_s14 + $0x6] sm:$0x3] }
 0x118   : > { %495 = vmatpush1.bf16.msra.mxu1 %v489_v9  ;;  %892 = vmatprep.mubr.bf16.mxu0 %v1347_v0  ;;  %v1279_v63 = vld [vmem:[%s1422_s14 + $0x10] sm:$0x3] }
 0x119   : > { %v849_v12 = vpack.c.bf16 %v845_v6, %v845_v6  ;;  %v850_v13 = vpack.c.bf16 %v846_v7, %v846_v7  ;;  %v536_v14 = vpop.permute.xlu1 %535 }
 0x11a   : > { %v540_v15 = vsel %vm539_vm6, %v536_v14, %v538_v8  ;;  %v541_v16 = vsel %vm539_vm6, %v538_v8, %v536_v14 }
 0x11b   : > { %v555_v18 = vmul.f32 %v548_v5, %v541_v16  ;;  %v556_v19 = vmul.f32 %v552_v10, %v540_v15  ;;  %v906_v23 = vpop.permute.xlu0 %905  ;;  %1272 = vmatprep.subr.msk.bf16.mxu0 %vm437_vm0, %v850_v13  ;;  %v855_v24 = vsel %vm437_vm0, %v849_v12, 0 }
 0x11c   : > { %861 = vmatpush1.bf16.msra.mxu0 %v855_v24 }
 0x11d   : > { %v559_v28 = vpack.c.bf16 %v555_v18, %v555_v18  ;;  %v560_v29 = vpack.c.bf16 %v556_v19, %v556_v19  ;;  %v904_v30 = vpop.permute.xlu1 %903 }
 0x11e   : > { %v908_v31 = vsel %vm907_vm7, %v904_v30, %v906_v23  ;;  %v909_v32 = vsel %vm907_vm7, %v906_v23, %v904_v30 }
 0x11f   : > { %v923_v34 = vmul.f32 %v916_v17, %v908_v31  ;;  %v924_v35 = vmul.f32 %v920_v25, %v909_v32  ;;  %v616_v36 = vpop.permute.xlu0 %615  ;;  %1254 = vmatmul.mubr.msk.bf16.vlgmr.msra.gmra.mrb[0].mxu1 %vm433_vm1, %v404_v27  ;;  %1257 = vmatprep.subr.msk.bf16.mxu1 %vm437_vm0, %v560_v29  ;;  %v565_v37 = vsel %vm437_vm0, %v559_v28, 0 }
 0x120   : > { %571 = vmatpush1.bf16.msra.mxu1 %v565_v37  ;;  %602 = vmatprep.mubr.bf16.mxu1 %v1347_v0 }
 0x121   : > { %v927_v41 = vpack.c.bf16 %v923_v34, %v923_v34  ;;  %v928_v42 = vpack.c.bf16 %v924_v35, %v924_v35  ;;  %v614_v43 = vpop.permute.xlu1 %613 }
 0x122   : > { %v618_v44 = vsel %vm617_vm8, %v614_v43, %v616_v36  ;;  %v619_v45 = vsel %vm617_vm8, %v616_v36, %v614_v43 }
 0x123   : > { %v633_v47 = vmul.f32 %v626_v33, %v619_v45  ;;  %v634_v48 = vmul.f32 %v630_v38, %v618_v44  ;;  %1273 = vmatmul.mubr.msk.bf16.vlgmr.msra.gmra.mrb[0].mxu0 %vm433_vm1, %v1271_v40  ;;  %1276 = vmatprep.subr.msk.bf16.mxu0 %vm437_vm0, %v928_v42  ;;  %v933_v49 = vsel %vm437_vm0, %v927_v41, 0  ;;  %v984_v52 = vpop.permute.xlu0 %983 }
 0x124   : > { %939 = vmatpush1.bf16.msra.mxu0 %v933_v49  ;;  %970 = vmatprep.mubr.bf16.mxu0 %v1347_v0 }
 0x125   : > { %v638_v51 = vpack.c.bf16 %v634_v48, %v634_v48  ;;  %v982_v20 = vpop.permute.xlu1 %981  ;;  %v637_v54 = vpack.c.bf16 %v633_v47, %v633_v47 }
 0x126   : > { %v986_v53 = vsel %vm985_vm9, %v982_v20, %v984_v52  ;;  %v987_v21 = vsel %vm985_vm9, %v984_v52, %v982_v20 }
 0x127   : > { %v1001_v55 = vmul.f32 %v994_v46, %v986_v53  ;;  %v1002_v56 = vmul.f32 %v998_v50, %v987_v21  ;;  %1261 = vmatprep.subr.msk.bf16.mxu1 %vm437_vm0, %v638_v51  ;;  %v643_v22 = vsel %vm437_vm0, %v637_v54, 0 }
 0x129   : > { %v1006_v58 = vpack.c.bf16 %v1002_v56, %v1002_v56  ;;  %v1005_v59 = vpack.c.bf16 %v1001_v55, %v1001_v55 }
 0x12b   : > { %1258 = vmatmul.mubr.msk.bf16.vlgmr.msra.gmra.mrb[0].mxu1 %vm433_vm1, %v1256_v57  ;;  %1280 = vmatprep.subr.msk.bf16.mxu0 %vm437_vm0, %v1006_v58  ;;  %v1011_v61 = vsel %vm437_vm0, %v1005_v59, 0 }
 0x12c   : > { %649 = vmatpush1.bf16.msra.mxu1 %v643_v22  ;;  %680 = vmatprep.mubr.bf16.mxu1 %v1347_v0 }
 0x12f   : > { %1277 = vmatmul.mubr.msk.bf16.vlgmr.msra.gmra.mrb[0].mxu0 %vm433_vm1, %v1275_v60 }
 0x130   : > { %1017 = vmatpush1.bf16.msra.mxu0 %v1011_v61  ;;  %1048 = vmatprep.mubr.bf16.mxu0 %v1347_v0 }
 0x134   : > { %v1071_v12 = vpop.permute.xlu0 %1070 }
 0x136   : > { %v1063_v6 = vpop.permute.xlu1 %1062 }
 0x137   : > { %1262 = vmatmul.mubr.msk.bf16.vlgmr.msra.gmra.mrb[0].mxu1 %vm433_vm1, %v1260_v62 }
 0x13b   : > { %1281 = vmatmul.mubr.msk.bf16.vlgmr.msra.gmra.mrb[0].mxu0 %vm433_vm1, %v1279_v63 }
 0x20a   : > { %v682_v1 = vpop.f32.mrb[0].mxu1 }
 0x20b   : > { %v684_v2 = vpop.f32.mrb[1].mxu1 }
 0x20c   : > { %v686_v3 = vpop.f32.mrb[2].mxu1 }
 0x20d   : > { %v687_v4 = vpop.f32.mrb[3].mxu1 }
 0x20e   : > { %v1050_v5 = vpop.f32.mrb[0].mxu0 }
 0x20f   : > { %v1288_v7 = vadd.f32 %v1050_v5, %v682_v1  ;;  %v1052_v8 = vpop.f32.mrb[1].mxu0 }
 0x210   : > { %v1289_v9 = vadd.f32 %v1052_v8, %v684_v2  ;;  %v1054_v10 = vpop.f32.mrb[2].mxu0 }
 0x211   : > { %v1065_v11 = vmul.f32 %v1288_v7, %v1063_v6  ;;  %v1055_v0 = vpop.f32.mrb[3].mxu0 }
 0x212   : > { %v1066_v13 = vmul.f32 %v1289_v9, %v1063_v6 }
 0x213   : > { %v1073_v14 = vadd.f32 %v1071_v12, %v1065_v11 }
 0x214   : > { %v1074_v15 = vadd.f32 %v1071_v12, %v1066_v13 }
 0x215   : > { %v1075_v16 = vmax.f32 %v1073_v14, 0.0 }
 0x216   : > { %v1076_v17 = vmax.f32 %v1074_v15, 0.0 }
 0x217   : > { %v1092_v18 = vsel %vm1091_vm10, %v1075_v16, 0.0 }
 0x218   : > { %v1282_v19 = vpack.c.bf16 %v1076_v17, %v1075_v16  ;;  %v1093_v23 = vsel %vm1091_vm10, %v1076_v17, 0.0 }
 0x219   : > { %v1094_v24 = vadd.f32 %v1093_v23, %v1092_v18 }
 0x21a   : > { %1283 = vst.sshfl [vmem:[%s356_s27] sm:$0x33 pattern:$0x76325410] %v1282_v19 }
 0x21b   : > { %1095 = vadd.xlane.f32.xlu1 %v1094_v24 }
 0x2a8   : > { %v1096_v25 = vpop.xlane.xlu1 %1095 }
 0x2a9   : > { %v1098_v26 = vmul.f32 0.00390625, %v1096_v25 }
 0x2ab   : > { %1100 = vst.msk [vmem:[%s360_s30] sm:$0xf] %vm1099_vm11, %v1098_v26 }
 0x2ac PF: > { %s18_s24 = sadd.s32 1, %s1345_s24  }
 0x2ad   : > { %p15_p4 = scmp.ge.s32.totalorder %s18_s24, 4  }
 0x2af   :  { %17 = sbr.rel (!%p15_p4) target bundleno = 1 (0x1), region = 113 }

</bundles_post_ra>
